<compile_context>
chip_gen: v6e
topology: v6e:2x2x1
jax: 0.10.0
libtpu: 0.0.40
codegen_flags: <defaults>
</compile_context>

<pallas_src>
import functools

import jax
import jax.numpy as jnp
from jax.experimental import pallas as pl
from jax.experimental.pallas import tpu as pltpu

BITS = 8
_SCALE = float(2 ** (BITS - 1))   # 128.0
_INV_SCALE = 1.0 / _SCALE         # exact power of two -> multiply, not divide


def _quant(x):
    """8-bit signed fixed-point quantization (Quantization with mean=0, std=1,
    divisor=1): clip(round(x*128), -128, 127) / 128."""
    return jnp.clip(jnp.round(x * _SCALE), -_SCALE, _SCALE - 1.0) * _INV_SCALE


# ---------------------------------------------------------------------------
# Single fused kernel: whole batch in one grid step, everything stays in VMEM.
# ---------------------------------------------------------------------------
def _fused_quanti_net_kernel(xp_ref, cw_ref, cb_ref, lw_ref, lb_ref, o_ref,
                             patch_scr, y_scr, *, n, c, cpad, wp, q):
    """
    xp_ref : [N, C, LP]        f32   zero-padded image, row-flattened per channel
    cw_ref : [OC, 9*cpad]      bf16  pre-quantized conv weight VALUES (k/128)
    cb_ref : [OC, 1]           f32   conv bias CODES (128 * q(b))
    lw_ref : [OC, Q, hidden]   bf16  pre-quantized linear weight VALUES, Q=H*(W+2)
    lb_ref : [1, hidden]       f32   linear bias CODES
    o_ref  : [N, hidden]       f32
    patch_scr : VMEM [9*cpad, Q] f32  per-image im2col patch (reused)
    y_scr     : VMEM [OC, N, Q]  f32  post-conv ReLU codes for the whole batch
    """
    # Leading 'quanti' module on the input -> integer codes.  The 1/128 scaling
    # is deferred into the code-domain arithmetic after each matmul (saves a VPU
    # multiply per operand element).  Zero padding quantizes to 0 exactly.
    cx = jnp.clip(jnp.round(xp_ref[...] * _SCALE), -_SCALE, _SCALE - 1.0)  # [N,C,LP]

    cw = cw_ref[...]                      # conv weight (quantized values, bf16)
    kb = cb_ref[...]                      # conv bias codes  (f32)
    lw = lw_ref[...]                      # linear weight (quantized values, bf16)
    klb = lb_ref[...]                     # linear bias codes (f32)

    # Alignment-padding rows (c..cpad per tap) are never written; zero the
    # buffer once so the matching zero weight columns multiply 0, not garbage.
    patch_scr[...] = jnp.zeros_like(patch_scr)

    for bi in range(n):                   # static unroll, n == batch (2)
        # ---- in-kernel im2col: every 3x3 tap of the row-flattened padded image
        # is one contiguous lane slice of length Q = H*(W+2).  Output columns
        # with j >= W are junk; lw_ref has zero rows there.
        for t in range(9):
            di, dj = t // 3, t % 3
            off = di * wp + dj
            patch_scr[t * cpad:t * cpad + c, :] = cx[bi, :, off:off + q]
        patch = patch_scr[...].astype(jnp.bfloat16)        # codes, exact in bf16

        # ---- Conv2d as one [OC, 9*cpad] @ [9*cpad, Q] MXU matmul (f32 acc).
        # One operand carries codes, the other quantized values, so
        # dot = 128 * conv(q(x); q(w)) exactly.
        d = jnp.dot(cw, patch, preferred_element_type=jnp.float32)       # [OC, Q]
        # quanti after Conv2d in code space: codes(q(y)) = clip(round(d + kb)).
        cy = jnp.clip(jnp.round(d + kb), -_SCALE, _SCALE - 1.0)
        # ReLU; the quanti module after ReLU is an exact identity -> elided.
        y_scr[:, bi, :] = jnp.maximum(cy, 0.0)

    # ---- Flatten + Linear for the whole batch: ONE OC-batched contraction with
    # M = N (no per-channel slicing, no M=1 dots), then a cheap leading-dim sum.
    y = y_scr[...].astype(jnp.bfloat16)                                   # [OC, N, Q]
    d2 = jnp.einsum("onq,oqh->onh", y, lw,
                    preferred_element_type=jnp.float32)                   # [OC, N, hid]
    d2 = jnp.sum(d2, axis=0)                                              # [N, hid]
    # quanti after Linear, ReLU (final quanti is an identity), then undo the
    # deferred 1/128 code scaling once on the tiny [N, hidden] output.
    cz = jnp.clip(jnp.round(d2 + klb), -_SCALE, _SCALE - 1.0)
    # Note: hidden=32 (<128 lanes) -> masked store; negligible at this size.
    o_ref[...] = (jnp.maximum(cz, 0.0) * _INV_SCALE).astype(o_ref.dtype)


# ---------------------------------------------------------------------------
# One-time parameter prep (offline): quantize all parameters once, cast the
# matmul weights to bf16, store biases as integer codes, and re-lay the linear
# weight out to match the kernel's width-padded conv-output column order.
# ---------------------------------------------------------------------------
def prepare_params(params, h, w):
    conv_w, conv_b = params["conv_w"], params["conv_b"]
    lin_w, lin_b = params["lin_w"], params["lin_b"]
    OC, C, KH, KW = conv_w.shape
    hidden, F = lin_w.shape
    assert (KH, KW) == (3, 3) and F == OC * h * w
    wp = w + 2
    cpad = max(8, ((C + 7) // 8) * 8)     # sublane-aligned rows per tap

    # Conv weight -> quantized VALUES, [OC, 9*cpad]; col = (kh*3+kw)*cpad + c,
    # zeros in the alignment-padding columns.
    cw = jnp.transpose(_quant(conv_w), (0, 2, 3, 1)).reshape(OC, 9, C)
    cw = jnp.pad(cw, ((0, 0), (0, 0), (0, cpad - C))).reshape(OC, 9 * cpad)
    cwm = cw.astype(jnp.bfloat16)

    # Biases -> integer CODES (128 * q(b)) so the kernel quantizes matmul
    # outputs with a plain round+clip (deferred 1/128 scaling).
    cbm = jnp.clip(jnp.round(conv_b * _SCALE), -_SCALE, _SCALE - 1.0).reshape(OC, 1)
    lbm = jnp.clip(jnp.round(lin_b * _SCALE), -_SCALE, _SCALE - 1.0).reshape(1, hidden)

    # Linear weight -> quantized VALUES, re-laid out [OC, H*(W+2), hidden] to
    # match the kernel's width-padded conv-output columns (q = i*(W+2)+j in
    # NCHW flatten order); the 2 pad columns per row get zero weight.
    lw = _quant(lin_w).T.reshape(OC, h, w, hidden)
    lw = jnp.pad(lw, ((0, 0), (0, 0), (0, wp - w), (0, 0)))
    lwm = lw.reshape(OC, h * wp, hidden).astype(jnp.bfloat16)

    return dict(cwm=cwm, cbm=cbm, lwm=lwm, lbm=lbm)


def quanti_net_forward(x_nchw, prepped):
    """Forward pass of the quantization-wrapped net.  x: [N, C, H, W] f32."""
    N, C, H, W = x_nchw.shape
    cwm, cbm, lwm, lbm = (prepped["cwm"], prepped["cbm"],
                          prepped["lwm"], prepped["lbm"])
    OC, KCP = cwm.shape
    cpad = KCP // 9
    _, Q, hidden = lwm.shape
    WP = W + 2
    assert Q == H * WP and C <= cpad

    # Zero-pad spatially, flatten each channel row-major, and add trailing lane
    # padding so every tap window [off, off+Q), off <= 2*WP+2, stays in range.
    LP = ((2 * WP + 2 + Q + 127) // 128) * 128
    xp = jnp.pad(x_nchw, ((0, 0), (0, 0), (1, 1), (1, 1))).reshape(N, C, (H + 2) * WP)
    xp = jnp.pad(xp, ((0, 0), (0, 0), (0, LP - (H + 2) * WP)))

    kern = functools.partial(_fused_quanti_net_kernel,
                             n=N, c=C, cpad=cpad, wp=WP, q=Q)
    out = pl.pallas_call(
        kern,
        out_shape=jax.ShapeDtypeStruct((N, hidden), jnp.float32),
        grid=(1,),                       # whole (small) batch in one step
        in_specs=[
            pl.BlockSpec((N, C, LP), lambda i: (0, 0, 0)),        # padded input
            pl.BlockSpec((OC, KCP), lambda i: (0, 0)),            # conv weight (bf16)
            pl.BlockSpec((OC, 1), lambda i: (0, 0)),              # conv bias codes
            pl.BlockSpec((OC, Q, hidden), lambda i: (0, 0, 0)),   # linear weight (bf16)
            pl.BlockSpec((1, hidden), lambda i: (0, 0)),          # linear bias codes
        ],
        out_specs=pl.BlockSpec((N, hidden), lambda i: (0, 0)),
        scratch_shapes=[
            pltpu.VMEM((KCP, Q), jnp.float32),      # per-image im2col patch
            pltpu.VMEM((OC, N, Q), jnp.float32),    # conv/ReLU codes, whole batch
        ],
        compiler_params=pltpu.CompilerParams(
            dimension_semantics=("arbitrary",)),    # single TC; don't split tiny work
    )(xp, cwm, cbm, lwm, lbm)
    return out


# ---------------------------------------------------------------------------
# Pure-JAX reference (independent path via lax.conv) for a correctness check.
# ---------------------------------------------------------------------------
def quanti_net_reference(x_nchw, params):
    conv_w = _quant(params["conv_w"])
    conv_b = _quant(params["conv_b"])
    lin_w = _quant(params["lin_w"])
    lin_b = _quant(params["lin_b"])
    x = _quant(x_nchw)
    y = jax.lax.conv_general_dilated(
        x, conv_w, window_strides=(1, 1), padding=((1, 1), (1, 1)),
        dimension_numbers=("NCHW", "OIHW", "NCHW"))
    y = y + conv_b[None, :, None, None]
    y = _quant(jnp.maximum(_quant(y), 0.0))
    flat = y.reshape(y.shape[0], -1)
    z = flat @ lin_w.T + lin_b
    return _quant(jnp.maximum(_quant(z), 0.0))


def init_params(key, in_c=4, out_c=8, h=16, w=16, hidden=32):
    k1, k2, k3, k4 = jax.random.split(key, 4)
    fan_conv = in_c * 3 * 3
    fan_lin = out_c * h * w
    conv_w = jax.random.uniform(k1, (out_c, in_c, 3, 3), jnp.float32,
                                -1.0 / fan_conv ** 0.5, 1.0 / fan_conv ** 0.5)
    conv_b = jax.random.uniform(k2, (out_c,), jnp.float32,
                                -1.0 / fan_conv ** 0.5, 1.0 / fan_conv ** 0.5)
    lin_w = jax.random.uniform(k3, (hidden, fan_lin), jnp.float32,
                               -1.0 / fan_lin ** 0.5, 1.0 / fan_lin ** 0.5)
    lin_b = jax.random.uniform(k4, (hidden,), jnp.float32,
                               -1.0 / fan_lin ** 0.5, 1.0 / fan_lin ** 0.5)
    return dict(conv_w=conv_w, conv_b=conv_b, lin_w=lin_w, lin_b=lin_b)


if __name__ == "__main__":
    key = jax.random.PRNGKey(0)
    kx, kp = jax.random.split(key)
    x = jax.random.normal(kx, (2, 4, 16, 16), jnp.float32)   # NCHW, like PyTorch
    params = init_params(kp)

    prepped = prepare_params(params, h=16, w=16)   # one-time offline prep + quantization
    fwd = jax.jit(quanti_net_forward)
    out = jax.block_until_ready(fwd(x, prepped))
    assert out.shape == (2, 32) and bool(jnp.all(jnp.isfinite(out)))

    ref = quanti_net_reference(x, params)
    # Off-by-at-most-one-quantization-code check (1 code = 1/128): summation
    # order differences between the kernel and the XLA reference can at most
    # flip one round() boundary.
    err = float(jnp.max(jnp.abs(out - ref)))
    assert err <= (1.0 / _SCALE) + 1e-6, err
    print("KERNEL_OK")
</pallas_src>

<mosaic_0001>
module attributes {stable_mosaic.version = 11 : i64} {
  func.func @_fused_quanti_net_kernel(%arg0: i32, %arg1: memref<2x4x384xf32, #tpu.memory_space<vmem>>, %arg2: memref<8x72xbf16, #tpu.memory_space<vmem>>, %arg3: memref<8x1xf32, #tpu.memory_space<vmem>>, %arg4: memref<8x288x32xbf16, #tpu.memory_space<vmem>>, %arg5: memref<1x32xf32, #tpu.memory_space<vmem>>, %arg6: memref<2x32xf32, #tpu.memory_space<vmem>>, %arg7: memref<72x288xf32, #tpu.memory_space<vmem>>, %arg8: memref<8x2x288xf32, #tpu.memory_space<vmem>>) attributes {dimension_semantics = [#tpu.dimension_semantics<arbitrary>], iteration_bounds = array<i64: 1>, scalar_prefetch = 0 : i64, scratch_operands = 2 : i64, tpu.core_type = #tpu.core_type<tc>, window_params = [{pipeline_mode = #tpu.pipeline_mode<synchronous>, transform_indices = @transform_0, window_bounds = array<i64: 2, 4, 384>}, {pipeline_mode = #tpu.pipeline_mode<synchronous>, transform_indices = @transform_1, window_bounds = array<i64: 8, 72>}, {pipeline_mode = #tpu.pipeline_mode<synchronous>, transform_indices = @transform_2, window_bounds = array<i64: 8, 1>}, {pipeline_mode = #tpu.pipeline_mode<synchronous>, transform_indices = @transform_3, window_bounds = array<i64: 8, 288, 32>}, {pipeline_mode = #tpu.pipeline_mode<synchronous>, transform_indices = @transform_4, window_bounds = array<i64: 1, 32>}, {pipeline_mode = #tpu.pipeline_mode<synchronous>, transform_indices = @transform_5, window_bounds = array<i64: 2, 32>}]} {
    %c0 = arith.constant 0 : index
    %c0_0 = arith.constant 0 : index
    %c0_1 = arith.constant 0 : index
    %0 = vector.load %arg1[%c0, %c0_0, %c0_1] : memref<2x4x384xf32, #tpu.memory_space<vmem>>, vector<2x4x384xf32>
    %cst = arith.constant 1.280000e+02 : f32
    %1 = vector.broadcast %cst : f32 to vector<2x4x384xf32>
    %2 = arith.mulf %0, %1 : vector<2x4x384xf32>
    %3 = math.roundeven %2 : vector<2x4x384xf32>
    %cst_2 = arith.constant -1.280000e+02 : f32
    %cst_3 = arith.constant 1.270000e+02 : f32
    %4 = vector.broadcast %cst_2 : f32 to vector<2x4x384xf32>
    %5 = arith.maximumf %4, %3 : vector<2x4x384xf32>
    %6 = vector.broadcast %cst_3 : f32 to vector<2x4x384xf32>
    %7 = arith.minimumf %6, %5 : vector<2x4x384xf32>
    %c0_4 = arith.constant 0 : index
    %c0_5 = arith.constant 0 : index
    %8 = vector.load %arg2[%c0_4, %c0_5] : memref<8x72xbf16, #tpu.memory_space<vmem>>, vector<8x72xbf16>
    %c0_6 = arith.constant 0 : index
    %c0_7 = arith.constant 0 : index
    %9 = vector.load %arg3[%c0_6, %c0_7] : memref<8x1xf32, #tpu.memory_space<vmem>>, vector<8x1xf32>
    %c0_8 = arith.constant 0 : index
    %c0_9 = arith.constant 0 : index
    %c0_10 = arith.constant 0 : index
    %10 = vector.load %arg4[%c0_8, %c0_9, %c0_10] : memref<8x288x32xbf16, #tpu.memory_space<vmem>>, vector<8x288x32xbf16>
    %c0_11 = arith.constant 0 : index
    %c0_12 = arith.constant 0 : index
    %11 = vector.load %arg5[%c0_11, %c0_12] : memref<1x32xf32, #tpu.memory_space<vmem>>, vector<1x32xf32>
    %cst_13 = arith.constant 0.000000e+00 : f32
    %12 = vector.broadcast %cst_13 : f32 to vector<72x288xf32>
    %c0_14 = arith.constant 0 : index
    %c0_15 = arith.constant 0 : index
    %13 = vector.load %arg7[%c0_14, %c0_15] : memref<72x288xf32, #tpu.memory_space<vmem>>, vector<72x288xf32>
    tpu.vector_store %arg7[%c0_14, %c0_15], %12 {strides = array<i32>} : memref<72x288xf32, #tpu.memory_space<vmem>>, vector<72x288xf32>,
    %14 = vector.extract_strided_slice %7 {offsets = [0, 0, 0], sizes = [1, 4, 288], strides = [1, 1, 1]} : vector<2x4x384xf32> to vector<1x4x288xf32>
    %15 = vector.shape_cast %14 : vector<1x4x288xf32> to vector<4x288xf32>
    %c0_16 = arith.constant 0 : index
    %c0_17 = arith.constant 0 : index
    %16 = vector.load %arg7[%c0_16, %c0_17] : memref<72x288xf32, #tpu.memory_space<vmem>>, vector<4x288xf32>
    tpu.vector_store %arg7[%c0_16, %c0_17], %15 {strides = array<i32>} : memref<72x288xf32, #tpu.memory_space<vmem>>, vector<4x288xf32>,
    %17 = vector.extract_strided_slice %7 {offsets = [0, 0, 1], sizes = [1, 4, 288], strides = [1, 1, 1]} : vector<2x4x384xf32> to vector<1x4x288xf32>
    %18 = vector.shape_cast %17 : vector<1x4x288xf32> to vector<4x288xf32>
    %c8 = arith.constant 8 : index
    %c0_18 = arith.constant 0 : index
    %19 = vector.load %arg7[%c8, %c0_18] : memref<72x288xf32, #tpu.memory_space<vmem>>, vector<4x288xf32>
    tpu.vector_store %arg7[%c8, %c0_18], %18 {strides = array<i32>} : memref<72x288xf32, #tpu.memory_space<vmem>>, vector<4x288xf32>,
    %20 = vector.extract_strided_slice %7 {offsets = [0, 0, 2], sizes = [1, 4, 288], strides = [1, 1, 1]} : vector<2x4x384xf32> to vector<1x4x288xf32>
    %21 = vector.shape_cast %20 : vector<1x4x288xf32> to vector<4x288xf32>
    %c16 = arith.constant 16 : index
    %c0_19 = arith.constant 0 : index
    %22 = vector.load %arg7[%c16, %c0_19] : memref<72x288xf32, #tpu.memory_space<vmem>>, vector<4x288xf32>
    tpu.vector_store %arg7[%c16, %c0_19], %21 {strides = array<i32>} : memref<72x288xf32, #tpu.memory_space<vmem>>, vector<4x288xf32>,
    %23 = vector.extract_strided_slice %7 {offsets = [0, 0, 18], sizes = [1, 4, 288], strides = [1, 1, 1]} : vector<2x4x384xf32> to vector<1x4x288xf32>
    %24 = vector.shape_cast %23 : vector<1x4x288xf32> to vector<4x288xf32>
    %c24 = arith.constant 24 : index
    %c0_20 = arith.constant 0 : index
    %25 = vector.load %arg7[%c24, %c0_20] : memref<72x288xf32, #tpu.memory_space<vmem>>, vector<4x288xf32>
    tpu.vector_store %arg7[%c24, %c0_20], %24 {strides = array<i32>} : memref<72x288xf32, #tpu.memory_space<vmem>>, vector<4x288xf32>,
    %26 = vector.extract_strided_slice %7 {offsets = [0, 0, 19], sizes = [1, 4, 288], strides = [1, 1, 1]} : vector<2x4x384xf32> to vector<1x4x288xf32>
    %27 = vector.shape_cast %26 : vector<1x4x288xf32> to vector<4x288xf32>
    %c32 = arith.constant 32 : index
    %c0_21 = arith.constant 0 : index
    %28 = vector.load %arg7[%c32, %c0_21] : memref<72x288xf32, #tpu.memory_space<vmem>>, vector<4x288xf32>
    tpu.vector_store %arg7[%c32, %c0_21], %27 {strides = array<i32>} : memref<72x288xf32, #tpu.memory_space<vmem>>, vector<4x288xf32>,
    %29 = vector.extract_strided_slice %7 {offsets = [0, 0, 20], sizes = [1, 4, 288], strides = [1, 1, 1]} : vector<2x4x384xf32> to vector<1x4x288xf32>
    %30 = vector.shape_cast %29 : vector<1x4x288xf32> to vector<4x288xf32>
    %c40 = arith.constant 40 : index
    %c0_22 = arith.constant 0 : index
    %31 = vector.load %arg7[%c40, %c0_22] : memref<72x288xf32, #tpu.memory_space<vmem>>, vector<4x288xf32>
    tpu.vector_store %arg7[%c40, %c0_22], %30 {strides = array<i32>} : memref<72x288xf32, #tpu.memory_space<vmem>>, vector<4x288xf32>,
    %32 = vector.extract_strided_slice %7 {offsets = [0, 0, 36], sizes = [1, 4, 288], strides = [1, 1, 1]} : vector<2x4x384xf32> to vector<1x4x288xf32>
    %33 = vector.shape_cast %32 : vector<1x4x288xf32> to vector<4x288xf32>
    %c48 = arith.constant 48 : index
    %c0_23 = arith.constant 0 : index
    %34 = vector.load %arg7[%c48, %c0_23] : memref<72x288xf32, #tpu.memory_space<vmem>>, vector<4x288xf32>
    tpu.vector_store %arg7[%c48, %c0_23], %33 {strides = array<i32>} : memref<72x288xf32, #tpu.memory_space<vmem>>, vector<4x288xf32>,
    %35 = vector.extract_strided_slice %7 {offsets = [0, 0, 37], sizes = [1, 4, 288], strides = [1, 1, 1]} : vector<2x4x384xf32> to vector<1x4x288xf32>
    %36 = vector.shape_cast %35 : vector<1x4x288xf32> to vector<4x288xf32>
    %c56 = arith.constant 56 : index
    %c0_24 = arith.constant 0 : index
    %37 = vector.load %arg7[%c56, %c0_24] : memref<72x288xf32, #tpu.memory_space<vmem>>, vector<4x288xf32>
    tpu.vector_store %arg7[%c56, %c0_24], %36 {strides = array<i32>} : memref<72x288xf32, #tpu.memory_space<vmem>>, vector<4x288xf32>,
    %38 = vector.extract_strided_slice %7 {offsets = [0, 0, 38], sizes = [1, 4, 288], strides = [1, 1, 1]} : vector<2x4x384xf32> to vector<1x4x288xf32>
    %39 = vector.shape_cast %38 : vector<1x4x288xf32> to vector<4x288xf32>
    %c64 = arith.constant 64 : index
    %c0_25 = arith.constant 0 : index
    %40 = vector.load %arg7[%c64, %c0_25] : memref<72x288xf32, #tpu.memory_space<vmem>>, vector<4x288xf32>
    tpu.vector_store %arg7[%c64, %c0_25], %39 {strides = array<i32>} : memref<72x288xf32, #tpu.memory_space<vmem>>, vector<4x288xf32>,
    %c0_26 = arith.constant 0 : index
    %c0_27 = arith.constant 0 : index
    %41 = vector.load %arg7[%c0_26, %c0_27] : memref<72x288xf32, #tpu.memory_space<vmem>>, vector<72x288xf32>
    %42 = arith.truncf %41 : vector<72x288xf32> to vector<72x288xbf16>
    %cst_28 = arith.constant dense<0.000000e+00> : vector<8x288xf32>
    %43 = tpu.matmul %8, %42, %cst_28 {dimension_numbers = #tpu.dot_dimension_numbers<[1], [0], [0], [1], [0, 0, 1, 1], [], []>} : vector<8x72xbf16>, vector<72x288xbf16>, vector<8x288xf32> -> vector<8x288xf32>
    %44 = vector.broadcast %9 : vector<8x1xf32> to vector<8x288xf32>
    %45 = arith.addf %43, %44 : vector<8x288xf32>
    %46 = math.roundeven %45 : vector<8x288xf32>
    %cst_29 = arith.constant -1.280000e+02 : f32
    %cst_30 = arith.constant 1.270000e+02 : f32
    %47 = vector.broadcast %cst_29 : f32 to vector<8x288xf32>
    %48 = arith.maximumf %47, %46 : vector<8x288xf32>
    %49 = vector.broadcast %cst_30 : f32 to vector<8x288xf32>
    %50 = arith.minimumf %49, %48 : vector<8x288xf32>
    %cst_31 = arith.constant 0.000000e+00 : f32
    %51 = vector.broadcast %cst_31 : f32 to vector<8x288xf32>
    %52 = arith.maximumf %50, %51 : vector<8x288xf32>
    %c0_32 = arith.constant 0 : index
    %c0_33 = arith.constant 0 : index
    %c0_34 = arith.constant 0 : index
    %53 = vector.load %arg8[%c0_32, %c0_33, %c0_34] : memref<8x2x288xf32, #tpu.memory_space<vmem>>, vector<8x1x288xf32>
    %54 = vector.shape_cast %53 : vector<8x1x288xf32> to vector<8x288xf32>
    %55 = vector.shape_cast %52 : vector<8x288xf32> to vector<8x1x288xf32>
    tpu.vector_store %arg8[%c0_32, %c0_33, %c0_34], %55 {strides = array<i32>} : memref<8x2x288xf32, #tpu.memory_space<vmem>>, vector<8x1x288xf32>,
    %56 = vector.extract_strided_slice %7 {offsets = [1, 0, 0], sizes = [1, 4, 288], strides = [1, 1, 1]} : vector<2x4x384xf32> to vector<1x4x288xf32>
    %57 = vector.shape_cast %56 : vector<1x4x288xf32> to vector<4x288xf32>
    %c0_35 = arith.constant 0 : index
    %c0_36 = arith.constant 0 : index
    %58 = vector.load %arg7[%c0_35, %c0_36] : memref<72x288xf32, #tpu.memory_space<vmem>>, vector<4x288xf32>
    tpu.vector_store %arg7[%c0_35, %c0_36], %57 {strides = array<i32>} : memref<72x288xf32, #tpu.memory_space<vmem>>, vector<4x288xf32>,
    %59 = vector.extract_strided_slice %7 {offsets = [1, 0, 1], sizes = [1, 4, 288], strides = [1, 1, 1]} : vector<2x4x384xf32> to vector<1x4x288xf32>
    %60 = vector.shape_cast %59 : vector<1x4x288xf32> to vector<4x288xf32>
    %c8_37 = arith.constant 8 : index
    %c0_38 = arith.constant 0 : index
    %61 = vector.load %arg7[%c8_37, %c0_38] : memref<72x288xf32, #tpu.memory_space<vmem>>, vector<4x288xf32>
    tpu.vector_store %arg7[%c8_37, %c0_38], %60 {strides = array<i32>} : memref<72x288xf32, #tpu.memory_space<vmem>>, vector<4x288xf32>,
    %62 = vector.extract_strided_slice %7 {offsets = [1, 0, 2], sizes = [1, 4, 288], strides = [1, 1, 1]} : vector<2x4x384xf32> to vector<1x4x288xf32>
    %63 = vector.shape_cast %62 : vector<1x4x288xf32> to vector<4x288xf32>
    %c16_39 = arith.constant 16 : index
    %c0_40 = arith.constant 0 : index
    %64 = vector.load %arg7[%c16_39, %c0_40] : memref<72x288xf32, #tpu.memory_space<vmem>>, vector<4x288xf32>
    tpu.vector_store %arg7[%c16_39, %c0_40], %63 {strides = array<i32>} : memref<72x288xf32, #tpu.memory_space<vmem>>, vector<4x288xf32>,
    %65 = vector.extract_strided_slice %7 {offsets = [1, 0, 18], sizes = [1, 4, 288], strides = [1, 1, 1]} : vector<2x4x384xf32> to vector<1x4x288xf32>
    %66 = vector.shape_cast %65 : vector<1x4x288xf32> to vector<4x288xf32>
    %c24_41 = arith.constant 24 : index
    %c0_42 = arith.constant 0 : index
    %67 = vector.load %arg7[%c24_41, %c0_42] : memref<72x288xf32, #tpu.memory_space<vmem>>, vector<4x288xf32>
    tpu.vector_store %arg7[%c24_41, %c0_42], %66 {strides = array<i32>} : memref<72x288xf32, #tpu.memory_space<vmem>>, vector<4x288xf32>,
    %68 = vector.extract_strided_slice %7 {offsets = [1, 0, 19], sizes = [1, 4, 288], strides = [1, 1, 1]} : vector<2x4x384xf32> to vector<1x4x288xf32>
    %69 = vector.shape_cast %68 : vector<1x4x288xf32> to vector<4x288xf32>
    %c32_43 = arith.constant 32 : index
    %c0_44 = arith.constant 0 : index
    %70 = vector.load %arg7[%c32_43, %c0_44] : memref<72x288xf32, #tpu.memory_space<vmem>>, vector<4x288xf32>
    tpu.vector_store %arg7[%c32_43, %c0_44], %69 {strides = array<i32>} : memref<72x288xf32, #tpu.memory_space<vmem>>, vector<4x288xf32>,
    %71 = vector.extract_strided_slice %7 {offsets = [1, 0, 20], sizes = [1, 4, 288], strides = [1, 1, 1]} : vector<2x4x384xf32> to vector<1x4x288xf32>
    %72 = vector.shape_cast %71 : vector<1x4x288xf32> to vector<4x288xf32>
    %c40_45 = arith.constant 40 : index
    %c0_46 = arith.constant 0 : index
    %73 = vector.load %arg7[%c40_45, %c0_46] : memref<72x288xf32, #tpu.memory_space<vmem>>, vector<4x288xf32>
    tpu.vector_store %arg7[%c40_45, %c0_46], %72 {strides = array<i32>} : memref<72x288xf32, #tpu.memory_space<vmem>>, vector<4x288xf32>,
    %74 = vector.extract_strided_slice %7 {offsets = [1, 0, 36], sizes = [1, 4, 288], strides = [1, 1, 1]} : vector<2x4x384xf32> to vector<1x4x288xf32>
    %75 = vector.shape_cast %74 : vector<1x4x288xf32> to vector<4x288xf32>
    %c48_47 = arith.constant 48 : index
    %c0_48 = arith.constant 0 : index
    %76 = vector.load %arg7[%c48_47, %c0_48] : memref<72x288xf32, #tpu.memory_space<vmem>>, vector<4x288xf32>
    tpu.vector_store %arg7[%c48_47, %c0_48], %75 {strides = array<i32>} : memref<72x288xf32, #tpu.memory_space<vmem>>, vector<4x288xf32>,
    %77 = vector.extract_strided_slice %7 {offsets = [1, 0, 37], sizes = [1, 4, 288], strides = [1, 1, 1]} : vector<2x4x384xf32> to vector<1x4x288xf32>
    %78 = vector.shape_cast %77 : vector<1x4x288xf32> to vector<4x288xf32>
    %c56_49 = arith.constant 56 : index
    %c0_50 = arith.constant 0 : index
    %79 = vector.load %arg7[%c56_49, %c0_50] : memref<72x288xf32, #tpu.memory_space<vmem>>, vector<4x288xf32>
    tpu.vector_store %arg7[%c56_49, %c0_50], %78 {strides = array<i32>} : memref<72x288xf32, #tpu.memory_space<vmem>>, vector<4x288xf32>,
    %80 = vector.extract_strided_slice %7 {offsets = [1, 0, 38], sizes = [1, 4, 288], strides = [1, 1, 1]} : vector<2x4x384xf32> to vector<1x4x288xf32>
    %81 = vector.shape_cast %80 : vector<1x4x288xf32> to vector<4x288xf32>
    %c64_51 = arith.constant 64 : index
    %c0_52 = arith.constant 0 : index
    %82 = vector.load %arg7[%c64_51, %c0_52] : memref<72x288xf32, #tpu.memory_space<vmem>>, vector<4x288xf32>
    tpu.vector_store %arg7[%c64_51, %c0_52], %81 {strides = array<i32>} : memref<72x288xf32, #tpu.memory_space<vmem>>, vector<4x288xf32>,
    %c0_53 = arith.constant 0 : index
    %c0_54 = arith.constant 0 : index
    %83 = vector.load %arg7[%c0_53, %c0_54] : memref<72x288xf32, #tpu.memory_space<vmem>>, vector<72x288xf32>
    %84 = arith.truncf %83 : vector<72x288xf32> to vector<72x288xbf16>
    %cst_55 = arith.constant dense<0.000000e+00> : vector<8x288xf32>
    %85 = tpu.matmul %8, %84, %cst_55 {dimension_numbers = #tpu.dot_dimension_numbers<[1], [0], [0], [1], [0, 0, 1, 1], [], []>} : vector<8x72xbf16>, vector<72x288xbf16>, vector<8x288xf32> -> vector<8x288xf32>
    %86 = vector.broadcast %9 : vector<8x1xf32> to vector<8x288xf32>
    %87 = arith.addf %85, %86 : vector<8x288xf32>
    %88 = math.roundeven %87 : vector<8x288xf32>
    %cst_56 = arith.constant -1.280000e+02 : f32
    %cst_57 = arith.constant 1.270000e+02 : f32
    %89 = vector.broadcast %cst_56 : f32 to vector<8x288xf32>
    %90 = arith.maximumf %89, %88 : vector<8x288xf32>
    %91 = vector.broadcast %cst_57 : f32 to vector<8x288xf32>
    %92 = arith.minimumf %91, %90 : vector<8x288xf32>
    %cst_58 = arith.constant 0.000000e+00 : f32
    %93 = vector.broadcast %cst_58 : f32 to vector<8x288xf32>
    %94 = arith.maximumf %92, %93 : vector<8x288xf32>
    %c0_59 = arith.constant 0 : index
    %c1 = arith.constant 1 : index
    %c0_60 = arith.constant 0 : index
    %95 = vector.load %arg8[%c0_59, %c1, %c0_60] : memref<8x2x288xf32, #tpu.memory_space<vmem>>, vector<8x1x288xf32>
    %96 = vector.shape_cast %95 : vector<8x1x288xf32> to vector<8x288xf32>
    %97 = vector.shape_cast %94 : vector<8x288xf32> to vector<8x1x288xf32>
    tpu.vector_store %arg8[%c0_59, %c1, %c0_60], %97 {strides = array<i32>} : memref<8x2x288xf32, #tpu.memory_space<vmem>>, vector<8x1x288xf32>,
    %c0_61 = arith.constant 0 : index
    %c0_62 = arith.constant 0 : index
    %c0_63 = arith.constant 0 : index
    %98 = vector.load %arg8[%c0_61, %c0_62, %c0_63] : memref<8x2x288xf32, #tpu.memory_space<vmem>>, vector<8x2x288xf32>
    %99 = arith.truncf %98 : vector<8x2x288xf32> to vector<8x2x288xbf16>
    "tpu.trace_start"() <{level = 10 : i32, message = "onq,oqh->onh"}> : () -> ()
    %cst_64 = arith.constant dense<0.000000e+00> : vector<8x2x32xf32>
    %100 = tpu.matmul %99, %10, %cst_64 {dimension_numbers = #tpu.dot_dimension_numbers<[2], [1], [1], [2], [0, 0, 0, 1, 1, 2], [0], [0]>} : vector<8x2x288xbf16>, vector<8x288x32xbf16>, vector<8x2x32xf32> -> vector<8x2x32xf32>
    "tpu.trace_stop"() : () -> ()
    %cst_65 = arith.constant dense<0.000000e+00> : vector<2x32xf32>
    %101 = vector.multi_reduction <add>, %100, %cst_65 [0] : vector<8x2x32xf32> to vector<2x32xf32>
    %102 = vector.broadcast %11 : vector<1x32xf32> to vector<2x32xf32>
    %103 = arith.addf %101, %102 : vector<2x32xf32>
    %104 = math.roundeven %103 : vector<2x32xf32>
    %cst_66 = arith.constant -1.280000e+02 : f32
    %cst_67 = arith.constant 1.270000e+02 : f32
    %105 = vector.broadcast %cst_66 : f32 to vector<2x32xf32>
    %106 = arith.maximumf %105, %104 : vector<2x32xf32>
    %107 = vector.broadcast %cst_67 : f32 to vector<2x32xf32>
    %108 = arith.minimumf %107, %106 : vector<2x32xf32>
    %cst_68 = arith.constant 0.000000e+00 : f32
    %109 = vector.broadcast %cst_68 : f32 to vector<2x32xf32>
    %110 = arith.maximumf %108, %109 : vector<2x32xf32>
    %cst_69 = arith.constant 7.812500e-03 : f32
    %111 = vector.broadcast %cst_69 : f32 to vector<2x32xf32>
    %112 = arith.mulf %110, %111 : vector<2x32xf32>
    %c0_70 = arith.constant 0 : index
    %c0_71 = arith.constant 0 : index
    %113 = vector.load %arg6[%c0_70, %c0_71] : memref<2x32xf32, #tpu.memory_space<vmem>>, vector<2x32xf32>
    tpu.vector_store %arg6[%c0_70, %c0_71], %112 {strides = array<i32>} : memref<2x32xf32, #tpu.memory_space<vmem>>, vector<2x32xf32>,
    return
  }
  func.func @transform_0(%arg0: i32) -> (i32, i32, i32) {
    %c0_i32 = arith.constant 0 : i32
    %c0_i32_0 = arith.constant 0 : i32
    %c0_i32_1 = arith.constant 0 : i32
    %c0_i32_2 = arith.constant 0 : i32
    return %c0_i32, %c0_i32_0, %c0_i32_1 : i32, i32, i32
  }
  func.func @transform_1(%arg0: i32) -> (i32, i32) {
    %c0_i32 = arith.constant 0 : i32
    %c0_i32_0 = arith.constant 0 : i32
    %c0_i32_1 = arith.constant 0 : i32
    return %c0_i32, %c0_i32_0 : i32, i32
  }
  func.func @transform_2(%arg0: i32) -> (i32, i32) {
    %c0_i32 = arith.constant 0 : i32
    %c0_i32_0 = arith.constant 0 : i32
    %c0_i32_1 = arith.constant 0 : i32
    return %c0_i32, %c0_i32_0 : i32, i32
  }
  func.func @transform_3(%arg0: i32) -> (i32, i32, i32) {
    %c0_i32 = arith.constant 0 : i32
    %c0_i32_0 = arith.constant 0 : i32
    %c0_i32_1 = arith.constant 0 : i32
    %c0_i32_2 = arith.constant 0 : i32
    return %c0_i32, %c0_i32_0, %c0_i32_1 : i32, i32, i32
  }
  func.func @transform_4(%arg0: i32) -> (i32, i32) {
    %c0_i32 = arith.constant 0 : i32
    %c0_i32_0 = arith.constant 0 : i32
    %c0_i32_1 = arith.constant 0 : i32
    return %c0_i32, %c0_i32_0 : i32, i32
  }
  func.func @transform_5(%arg0: i32) -> (i32, i32) {
    %c0_i32 = arith.constant 0 : i32
    %c0_i32_0 = arith.constant 0 : i32
    %c0_i32_1 = arith.constant 0 : i32
    return %c0_i32, %c0_i32_0 : i32, i32
  }
}

</mosaic_0001>

<bundles_post_ra>
// kernel: quanti_net_forward.1
= control target key start
LH: loop header
LB: loop body
LE: loop exit
PB: predicated region body
PF: predicated region fallthrough
CT: control target
= control target key end

     0   :  { %vm335_vm0 = vcmask 261120   ;;  %v3601_v4 = vmov 0.0   ;;  %vm367_vm3 = vcmask 257024   ;;  %s3602_s26 = smov 90   ;;  %s3604_s27 = smov 91   ;;  %vm3610_vm6 = vmmov 0   ;;  %s4474_s0 = inlined_call_operand.vmem [shape: f32[2,4,384], index: 0, kind: input, shape index: {}]   ;;  %s4475_s1 = inlined_call_operand.vmem [shape: bf16[8,72], index: 1, kind: input, shape index: {}]   ;;  %s4476_s2 = inlined_call_operand.vmem [shape: f32[8,1], index: 2, kind: input, shape index: {}]   ;;  %s4477_s3 = inlined_call_operand.vmem [shape: bf16[8,288,32], index: 3, kind: input, shape index: {}]   ;;  %s4478_s4 = inlined_call_operand.vmem [shape: f32[1,32], index: 4, kind: input, shape index: {}]   ;;  %s4479_s5 = inlined_call_operand.hbm [shape: f32[2,32], index: 5, kind: output, shape index: {}]  }
   0x1   :  { %v23_v0 = vld [vmem:[%s4474_s0 + $0x8] sm:$0xf]  ;;  %v22_v1 = vld [vmem:[%s4474_s0] sm:$0xff]  ;;  %333 = vst [vmem:[#allocation2] sm:$0xff] %v3601_v4  ;;  %334 = vst [vmem:[#allocation2 + $0x8] sm:$0xff] %v3601_v4  ;;  %3231 = vmatprep.subr.bf16.mxu1 %v3601_v4  ;;  %s3605_s28 = smov 109   ;;  %3241 = vmatprep.mubr.msk.bf16.mxu1 %vm3610_vm6, %v3601_v4 }
   0x2   :  { %v27_v2 = vmul.f32 128.0, %v23_v0  ;;  %v26_v3 = vmul.f32 128.0, %v22_v1  ;;  %337 = vst [vmem:[#allocation2 + $0x18] sm:$0xff] %v3601_v4  ;;  %338 = vst [vmem:[#allocation2 + $0x20] sm:$0xff] %v3601_v4  ;;  %v24_v6 = vld [vmem:[%s4474_s0 + $0xc] sm:$0xff]  ;;  %s3606_s29 = smov 108  }
   0x3   :  { %340 = vst [vmem:[#allocation2 + $0x30] sm:$0xff] %v3601_v4  ;;  %341 = vst [vmem:[#allocation2 + $0x38] sm:$0xff] %v3601_v4  ;;  %v28_v14 = vmul.f32 128.0, %v24_v6  ;;  %v25_v23 = vld [vmem:[%s4474_s0 + $0x14] sm:$0xf]  ;;  %s3603_s0 = smov 92  }
   0x4   :  { %343 = vst [vmem:[#allocation2 + $0x48] sm:$0xff] %v3601_v4  ;;  %344 = vst [vmem:[#allocation2 + $0x50] sm:$0xff] %v3601_v4  ;;  %v3333_v5 = vcvt.f32.s32 %v27_v2  ;;  %v3331_v7 = vand.u32 2147483647, %v27_v2  ;;  %v3325_v8 = vcvt.f32.s32 %v26_v3  ;;  %v3336_v10 = vand.u32 2147483648, %v27_v2  ;;  %s3607_s30 = smov 126  }
   0x5   :  { %346 = vst [vmem:[#allocation2 + $0x60] sm:$0xff] %v3601_v4  ;;  %347 = vst [vmem:[#allocation2 + $0x68] sm:$0xff] %v3601_v4  ;;  %v3323_v11 = vand.u32 2147483647, %v26_v3  ;;  %v3328_v13 = vand.u32 2147483648, %v26_v3  ;;  %v3341_v19 = vcvt.f32.s32 %v28_v14  ;;  %v29_v28 = vmul.f32 128.0, %v25_v23 }
   0x6   :  { %349 = vst [vmem:[#allocation2 + $0x78] sm:$0xff] %v3601_v4  ;;  %350 = vst [vmem:[#allocation2 + $0x80] sm:$0xff] %v3601_v4  ;;  %v3334_v9 = vcvt.s32.f32 %v3333_v5  ;;  %v3326_v12 = vcvt.s32.f32 %v3325_v8  ;;  %vm3332_vm1 = vcmp.lt.f32.partialorder %v3331_v7, 8388608.0  ;;  %v3339_v30 = vand.u32 2147483647, %v28_v14  ;;  %s3608_s6 = smov 110  }
   0x7   :  { %352 = vst [vmem:[#allocation2 + $0x90] sm:$0xff] %v3601_v4  ;;  %353 = vst [vmem:[#allocation2 + $0x98] sm:$0xff] %v3601_v4  ;;  %vm3324_vm2 = vcmp.lt.f32.partialorder %v3323_v11, 8388608.0  ;;  %v3342_v26 = vcvt.s32.f32 %v3341_v19  ;;  %v3347_v32 = vand.u32 2147483647, %v29_v28  ;;  %v3349_v33 = vcvt.f32.s32 %v29_v28  ;;  %s3609_s7 = smov 127  }
   0x8   :  { %355 = vst [vmem:[#allocation2 + $0xa8] sm:$0xff] %v3601_v4  ;;  %356 = vst [vmem:[#allocation2 + $0xb0] sm:$0xff] %v3601_v4  ;;  %v3335_v15 = vand.u32 2147483647, %v3334_v9  ;;  %v3327_v16 = vand.u32 2147483647, %v3326_v12 }
   0x9   :  { %358 = vst [vmem:[#allocation2 + $0xc0] sm:$0xff] %v3601_v4  ;;  %359 = vst [vmem:[#allocation2 + $0xc8] sm:$0xff] %v3601_v4  ;;  %v3343_v31 = vand.u32 2147483647, %v3342_v26  ;;  %v3344_v34 = vand.u32 2147483648, %v28_v14  ;;  %v3352_v35 = vand.u32 2147483648, %v29_v28  ;;  %v3350_v36 = vcvt.s32.f32 %v3349_v33 }
   0xa   :  { %360 = vst.msk [vmem:[#allocation2 + $0xd0] sm:$0xff] %vm335_vm0, %v3601_v4  ;;  %336 = vst.msk [vmem:[#allocation2 + $0x10] sm:$0xff] %vm335_vm0, %v3601_v4  ;;  %v3337_v17 = vor.u32 %v3336_v10, %v3335_v15  ;;  %v3329_v18 = vor.u32 %v3328_v13, %v3327_v16  ;;  %vm3340_vm4 = vcmp.lt.f32.partialorder %v3339_v30, 8388608.0  ;;  %vm3348_vm5 = vcmp.lt.f32.partialorder %v3347_v32, 8388608.0  ;;  %v43_v51 = vld [vmem:[%s4476_s2] sm:$0xff] }
   0xb   :  { %339 = vst.msk [vmem:[#allocation2 + $0x28] sm:$0xff] %vm335_vm0, %v3601_v4  ;;  %342 = vst.msk [vmem:[#allocation2 + $0x40] sm:$0xff] %vm335_vm0, %v3601_v4  ;;  %v3351_v37 = vand.u32 2147483647, %v3350_v36  ;;  %v3345_v38 = vor.u32 %v3344_v34, %v3343_v31  ;;  %v3611_v50 = vmov 0  }
   0xc   :  { %345 = vst.msk [vmem:[#allocation2 + $0x58] sm:$0xff] %vm335_vm0, %v3601_v4  ;;  %348 = vst.msk [vmem:[#allocation2 + $0x70] sm:$0xff] %vm335_vm0, %v3601_v4  ;;  %v3338_v20 = vsel %vm3332_vm1, %v3337_v17, %v27_v2  ;;  %v3330_v22 = vsel %vm3324_vm2, %v3329_v18, %v26_v3  ;;  %582 = vmatprep.mubr.bf16.mxu0 %v3611_v50  ;;  %3425 = vset.pattern.permute.xlu0 %v3611_v50 }
   0xd   :  { %351 = vst.msk [vmem:[#allocation2 + $0x88] sm:$0xff] %vm335_vm0, %v3601_v4  ;;  %354 = vst.msk [vmem:[#allocation2 + $0xa0] sm:$0xff] %vm335_vm0, %v3601_v4  ;;  %v35_v21 = vmax.f32 %v3338_v20, -128.0  ;;  %v34_v24 = vmax.f32 %v3330_v22, -128.0  ;;  %v3353_v39 = vor.u32 %v3352_v35, %v3351_v37  ;;  %v3346_v40 = vsel %vm3340_vm4, %v3345_v38, %v28_v14 }
   0xe   :  { %357 = vst.msk [vmem:[#allocation2 + $0xb8] sm:$0xff] %vm335_vm0, %v3601_v4  ;;  %v36_v42 = vmax.f32 %v3346_v40, -128.0 }
   0xf   :  { %v3694_v25 = vmin.f32 %v35_v21, 127.0  ;;  %v38_v27 = vmin.f32 %v34_v24, 127.0  ;;  %v3354_v41 = vsel %vm3348_vm5, %v3353_v39, %v29_v28 }
  0x10   :  { %v37_v43 = vmax.f32 %v3354_v41, -128.0  ;;  %v40_v44 = vmin.f32 %v36_v42, 127.0 }
  0x11   :  { %478 = vrot.lane.b32.xlu1 %v3694_v25, %s3602_s26  ;;  %368 = vst.msk [vmem:[#allocation2 + $0x10] sm:$0xf] %vm367_vm3, %v3694_v25  ;;  %474 = vrot.lane.b32.xlu0 %v38_v27, %s3602_s26  ;;  %v363_v29 = vcombine.high %v38_v27, %v38_v27  ;;  %365 = vst [vmem:[#allocation2] sm:$0xf] %v38_v27 }
  0x12   :  { %v41_v45 = vmin.f32 %v37_v43, 127.0  ;;  %v742_v46 = vcombine.high %v40_v44, %v40_v44 }
  0x13   :  { %366 = vst [vmem:[#allocation2 + $0x8] sm:$0xf] %v363_v29 }
  0x15   :  { %444 = vrot.lane.b32.xlu1 %v38_v27, %s3603_s0  ;;  %448 = vrot.lane.b32.xlu0 %v3694_v25, %s3603_s0 }
  0x18   :  { %v3725_v47 = vld [vmem:[#allocation2 + $0x10] sm:$0xff]  ;;  %v3731_v49 = vld [vmem:[#allocation2] sm:$0xff] }
  0x19   :  { %446 = vrot.lane.b32.xlu1 %v363_v29, %s3603_s0  ;;  %463 = vrot.lane.b32.xlu0 %v3694_v25, %s3604_s27  ;;  %746 = vst.msk [vmem:[#allocation2 + $0x10] sm:$0xf] %vm367_vm3, %v41_v45  ;;  %744 = vst [vmem:[#allocation2] sm:$0xf] %v40_v44 }
  0x1a   :  { %v3729_v48 = vld [vmem:[#allocation2 + $0x8] sm:$0xff] }
  0x1b   :  { %745 = vst [vmem:[#allocation2 + $0x8] sm:$0xf] %v742_v46 }
  0x1d   :  { %461 = vrot.lane.b32.xlu1 %v363_v29, %s3604_s27  ;;  %459 = vrot.lane.b32.xlu0 %v38_v27, %s3604_s27 }
  0x21   :  { %416 = vrot.lane.b32.xlu1 %v363_v29, %s3605_s28  ;;  %476 = vrot.lane.b32.xlu0 %v363_v29, %s3602_s26 }
  0x25   :  { %431 = vrot.lane.b32.xlu1 %v363_v29, %s3606_s29  ;;  %418 = vrot.lane.b32.xlu0 %v3694_v25, %s3605_s28 }
  0x29   :  { %414 = vrot.lane.b32.xlu1 %v38_v27, %s3605_s28  ;;  %433 = vrot.lane.b32.xlu0 %v3694_v25, %s3606_s29 }
  0x2d   :  { %386 = vrot.lane.b32.xlu1 %v363_v29, %s3607_s30  ;;  %429 = vrot.lane.b32.xlu0 %v38_v27, %s3606_s29 }
  0x31   :  { %401 = vrot.lane.b32.xlu1 %v363_v29, %s3608_s6  ;;  %388 = vrot.lane.b32.xlu0 %v3694_v25, %s3607_s30 }
  0x35   :  { %384 = vrot.lane.b32.xlu1 %v38_v27, %s3607_s30  ;;  %403 = vrot.lane.b32.xlu0 %v3694_v25, %s3608_s6 }
  0x39   :  { %371 = vrot.lane.b32.xlu1 %v363_v29, %s3609_s7  ;;  %399 = vrot.lane.b32.xlu0 %v38_v27, %s3608_s6 }
  0x3d   :  { %369 = vrot.lane.b32.xlu1 %v38_v27, %s3609_s7  ;;  %373 = vrot.lane.b32.xlu0 %v3694_v25, %s3609_s7 }
  0x41   :  { %847 = vrot.lane.b32.xlu1 %v742_v46, %s3602_s26  ;;  %845 = vrot.lane.b32.xlu0 %v40_v44, %s3602_s26 }
  0x45   :  { %819 = vrot.lane.b32.xlu1 %v742_v46, %s3603_s0  ;;  %849 = vrot.lane.b32.xlu0 %v41_v45, %s3602_s26 }
  0x49   :  { %833 = vrot.lane.b32.xlu1 %v742_v46, %s3604_s27  ;;  %821 = vrot.lane.b32.xlu0 %v41_v45, %s3603_s0 }
  0x4d   :  { %817 = vrot.lane.b32.xlu1 %v40_v44, %s3603_s0  ;;  %835 = vrot.lane.b32.xlu0 %v41_v45, %s3604_s27 }
  0x51   :  { %791 = vrot.lane.b32.xlu1 %v742_v46, %s3605_s28  ;;  %831 = vrot.lane.b32.xlu0 %v40_v44, %s3604_s27 }
  0x55   :  { %805 = vrot.lane.b32.xlu1 %v742_v46, %s3606_s29  ;;  %793 = vrot.lane.b32.xlu0 %v41_v45, %s3605_s28 }
  0x59   :  { %789 = vrot.lane.b32.xlu1 %v40_v44, %s3605_s28  ;;  %807 = vrot.lane.b32.xlu0 %v41_v45, %s3606_s29 }
  0x5d   :  { %763 = vrot.lane.b32.xlu1 %v742_v46, %s3607_s30  ;;  %803 = vrot.lane.b32.xlu0 %v40_v44, %s3606_s29 }
  0x61   :  { %777 = vrot.lane.b32.xlu1 %v742_v46, %s3608_s6  ;;  %765 = vrot.lane.b32.xlu0 %v41_v45, %s3607_s30 }
  0x65   :  { %761 = vrot.lane.b32.xlu1 %v40_v44, %s3607_s30  ;;  %779 = vrot.lane.b32.xlu0 %v41_v45, %s3608_s6 }
  0x69   :  { %749 = vrot.lane.b32.xlu1 %v742_v46, %s3609_s7  ;;  %775 = vrot.lane.b32.xlu0 %v40_v44, %s3608_s6 }
  0x6d   :  { %747 = vrot.lane.b32.xlu1 %v40_v44, %s3609_s7  ;;  %751 = vrot.lane.b32.xlu0 %v41_v45, %s3609_s7 }
  0x6e   :  { %10 = vsyncpa [#allocation5], 0  ;;  %vm450_vm7 = vcmask 752640   ;;  %vm540_vm8 = vcmask 1043456   ;;  %vm465_vm9 = vcmask 744448   ;;  %vm480_vm10 = vcmask 736256  }
  0x6f   :  { %vm420_vm11 = vcmask 891904   ;;  %vm435_vm12 = vcmask 883712   ;;  %vm390_vm13 = vcmask 1031168   ;;  %vm405_vm14 = vcmask 900096   ;;  %v3791_v43 = vld [vmem:[#allocation2 + $0x18] sm:$0xff]  ;;  %s3614_s19 = smov [#allocation4]  }
  0x70   :  { %vm375_vm15 = vcmask 1039360   ;;  %vm536_vm1 = vcmask 588800   ;;  %s2852_s20 = sshll.u32 %s3614_s19, 4  ;;  %s2853_s20 = int_to_ptr.vmem [resolvable:$true] %s2852_s20 }
  0x71   :  { %533 = vperm.xlu0 %3425, %v43_v51   ;;  %p3584_p1 = scmp.lt.s32.totalorder %s2853_s20, %s2853_s20 }
  0x83   :  { %v479_v52 = vpop.permute.xlu1 %478  ;;  %v475_v53 = vpop.permute.xlu0 %474 }
  0x84   :  { %488 = vst.msk [vmem:[#allocation2 + $0xd0] sm:$0xf] %vm367_vm3, %v479_v52 }
  0x87   :  { %v445_v54 = vpop.permute.xlu1 %444  ;;  %v449_v55 = vpop.permute.xlu0 %448 }
  0x88   :  { %458 = vst.msk [vmem:[#allocation2 + $0xa0] sm:$0xf] %vm367_vm3, %v449_v55 }
  0x8b   :  { %v447_v56 = vpop.permute.xlu1 %446  ;;  %v515_v57 = vld [vmem:[#allocation2 + $0xd0] sm:$0xff]  ;;  %v464_v58 = vpop.permute.xlu0 %463 }
  0x8c   :  { %v451_v59 = vsel %vm450_vm7, %v445_v54, %v447_v56  ;;  %v452_v60 = vsel %vm450_vm7, %v447_v56, %v449_v55  ;;  %v530_v61 = vpack.c.bf16 %v515_v57, %v515_v57  ;;  %473 = vst.msk [vmem:[#allocation2 + $0xb8] sm:$0xf] %vm367_vm3, %v464_v58 }
  0x8d   :  { %456 = vst [vmem:[#allocation2 + $0x90] sm:$0xf] %v451_v59  ;;  %457 = vst [vmem:[#allocation2 + $0x98] sm:$0xf] %v452_v60 }
  0x8e   :  { %v548_v62 = vsel %vm540_vm8, %v530_v61, 0 }
  0x8f   :  { %v462_v63 = vpop.permute.xlu1 %461  ;;  %3232 = vmatpush3.bf16.msra.mxu1 %v548_v62  ;;  %v460_v0 = vpop.permute.xlu0 %459  ;;  %v509_v6 = vld [vmem:[#allocation2 + $0xa0] sm:$0xff] }
  0x90   :  { %v467_v1 = vsel %vm465_vm9, %v462_v63, %v464_v58  ;;  %3233 = vmatprep.subr.bf16.mxu1 %v3601_v4  ;;  %v466_v2 = vsel %vm465_vm9, %v460_v0, %v462_v63 }
  0x91   :  { %472 = vst [vmem:[#allocation2 + $0xb0] sm:$0xf] %v467_v1  ;;  %471 = vst [vmem:[#allocation2 + $0xa8] sm:$0xf] %v466_v2 }
  0x93   :  { %v417_v3 = vpop.permute.xlu1 %416  ;;  %v477_v5 = vpop.permute.xlu0 %476  ;;  %v512_v7 = vld [vmem:[#allocation2 + $0xb8] sm:$0xff] }
  0x94   :  { %v481_v8 = vsel %vm480_vm10, %v475_v53, %v477_v5  ;;  %v482_v9 = vsel %vm480_vm10, %v477_v5, %v479_v52  ;;  %v527_v10 = vpack.c.bf16 %v512_v7, %v509_v6  ;;  %v508_v23 = vld [vmem:[#allocation2 + $0x98] sm:$0xff]  ;;  %v507_v29 = vld [vmem:[#allocation2 + $0x90] sm:$0xff] }
  0x95   :  { %486 = vst [vmem:[#allocation2 + $0xc0] sm:$0xf] %v481_v8  ;;  %487 = vst [vmem:[#allocation2 + $0xc8] sm:$0xf] %v482_v9 }
  0x96   :  { %3234 = vmatpush3.bf16.msra.mxu1 %v527_v10 }
  0x97   :  { %v432_v11 = vpop.permute.xlu1 %431  ;;  %v419_v12 = vpop.permute.xlu0 %418  ;;  %3235 = vmatprep.subr.bf16.mxu1 %v3601_v4 }
  0x98   :  { %v422_v13 = vsel %vm420_vm11, %v417_v3, %v419_v12  ;;  %428 = vst.msk [vmem:[#allocation2 + $0x70] sm:$0xf] %vm367_vm3, %v419_v12  ;;  %v511_v20 = vld [vmem:[#allocation2 + $0xb0] sm:$0xff]  ;;  %v510_v27 = vld [vmem:[#allocation2 + $0xa8] sm:$0xff] }
  0x99   :  { %427 = vst [vmem:[#allocation2 + $0x68] sm:$0xf] %v422_v13  ;;  %v526_v26 = vpack.c.bf16 %v511_v20, %v508_v23  ;;  %v525_v31 = vpack.c.bf16 %v510_v27, %v507_v29 }
  0x9b   :  { %v415_v14 = vpop.permute.xlu1 %414  ;;  %v434_v16 = vpop.permute.xlu0 %433 }
  0x9c   :  { %v421_v15 = vsel %vm420_vm11, %v415_v14, %v417_v3  ;;  %v437_v17 = vsel %vm435_vm12, %v432_v11, %v434_v16  ;;  %443 = vst.msk [vmem:[#allocation2 + $0x88] sm:$0xf] %vm367_vm3, %v434_v16  ;;  %v514_v18 = vld [vmem:[#allocation2 + $0xc8] sm:$0xff]  ;;  %v513_v19 = vld [vmem:[#allocation2 + $0xc0] sm:$0xff] }
  0x9d   :  { %426 = vst [vmem:[#allocation2 + $0x60] sm:$0xf] %v421_v15  ;;  %442 = vst [vmem:[#allocation2 + $0x80] sm:$0xf] %v437_v17  ;;  %v529_v4 = vpack.c.bf16 %v514_v18, %v514_v18  ;;  %v528_v21 = vpack.c.bf16 %v513_v19, %v513_v19  ;;  %v3810_v18 = vld [vmem:[%s4475_s1] sm:$0xf] }
  0x9f   :  { %v387_v22 = vpop.permute.xlu1 %386  ;;  %2860 = vmatprep.subr.msk.bf16.mxu0 %vm540_vm8, %v529_v4  ;;  %v430_v24 = vpop.permute.xlu0 %429  ;;  %v542_v25 = vsel %vm540_vm8, %v528_v21, 0  ;;  %v503_v33 = vld [vmem:[#allocation2 + $0x70] sm:$0xff] }
  0xa0   :  { %v436_v28 = vsel %vm435_vm12, %v430_v24, %v432_v11  ;;  %557 = vmatpush1.bf16.msra.mxu0 %v542_v25  ;;  %v502_v37 = vld [vmem:[#allocation2 + $0x68] sm:$0xff] }
  0xa1   :  { %441 = vst [vmem:[#allocation2 + $0x78] sm:$0xf] %v436_v28  ;;  %558 = vmatprep.subr.bf16.mxu0 %v526_v26 }
  0xa3   :  { %v402_v30 = vpop.permute.xlu1 %401  ;;  %v389_v32 = vpop.permute.xlu0 %388  ;;  %v506_v34 = vld [vmem:[#allocation2 + $0x88] sm:$0xff] }
  0xa4   :  { %v392_v35 = vsel %vm390_vm13, %v387_v22, %v389_v32  ;;  %398 = vst.msk [vmem:[#allocation2 + $0x40] sm:$0xf] %vm367_vm3, %v389_v32  ;;  %559 = vmatpush1.bf16.msra.mxu0 %v525_v31  ;;  %v524_v36 = vpack.c.bf16 %v506_v34, %v503_v33  ;;  %v505_v38 = vld [vmem:[#allocation2 + $0x80] sm:$0xff] }
  0xa5   :  { %397 = vst [vmem:[#allocation2 + $0x38] sm:$0xf] %v392_v35  ;;  %v523_v39 = vpack.c.bf16 %v505_v38, %v502_v37  ;;  %v501_v45 = vld [vmem:[#allocation2 + $0x60] sm:$0xff] }
  0xa6   :  { %3236 = vmatpush3.bf16.msra.mxu1 %v524_v36 }
  0xa7   :  { %v385_v40 = vpop.permute.xlu1 %384  ;;  %560 = vmatprep.subr.bf16.mxu0 %v523_v39  ;;  %v404_v42 = vpop.permute.xlu0 %403  ;;  %3237 = vmatprep.subr.bf16.mxu1 %v3791_v43 }
  0xa8   :  { %v391_v41 = vsel %vm390_vm13, %v385_v40, %v387_v22  ;;  %v407_v44 = vsel %vm405_vm14, %v402_v30, %v404_v42  ;;  %413 = vst.msk [vmem:[#allocation2 + $0x58] sm:$0xf] %vm367_vm3, %v404_v42  ;;  %v504_v46 = vld [vmem:[#allocation2 + $0x78] sm:$0xff] }
  0xa9   :  { %396 = vst [vmem:[#allocation2 + $0x30] sm:$0xf] %v391_v41  ;;  %412 = vst [vmem:[#allocation2 + $0x50] sm:$0xf] %v407_v44  ;;  %v522_v51 = vpack.c.bf16 %v504_v46, %v501_v45 }
  0xab   :  { %v372_v52 = vpop.permute.xlu1 %371  ;;  %561 = vmatpush1.bf16.msra.mxu0 %v522_v51  ;;  %v400_v53 = vpop.permute.xlu0 %399  ;;  %v497_v58 = vld [vmem:[#allocation2 + $0x40] sm:$0xff] }
  0xac   :  { %v406_v54 = vsel %vm405_vm14, %v400_v53, %v402_v30  ;;  %v496_v62 = vld [vmem:[#allocation2 + $0x38] sm:$0xff] }
  0xad   :  { %411 = vst [vmem:[#allocation2 + $0x48] sm:$0xf] %v406_v54 }
  0xaf   :  { %v370_v55 = vpop.permute.xlu1 %369  ;;  %v374_v57 = vpop.permute.xlu0 %373  ;;  %v500_v59 = vld [vmem:[#allocation2 + $0x58] sm:$0xff] }
  0xb0   :  { %v376_v56 = vsel %vm375_vm15, %v370_v55, %v372_v52  ;;  %v377_v60 = vsel %vm375_vm15, %v372_v52, %v374_v57  ;;  %383 = vst.msk [vmem:[#allocation2 + $0x28] sm:$0xf] %vm367_vm3, %v374_v57  ;;  %v521_v61 = vpack.c.bf16 %v500_v59, %v497_v58  ;;  %v499_v63 = vld [vmem:[#allocation2 + $0x50] sm:$0xff] }
  0xb1   :  { %381 = vst [vmem:[#allocation2 + $0x18] sm:$0xf] %v376_v56  ;;  %382 = vst [vmem:[#allocation2 + $0x20] sm:$0xf] %v377_v60  ;;  %v520_v0 = vpack.c.bf16 %v499_v63, %v496_v62  ;;  %v495_v5 = vld [vmem:[#allocation2 + $0x30] sm:$0xff] }
  0xb2   :  { %3238 = vmatpush3.bf16.msra.mxu1 %v521_v61 }
  0xb3   :  { %v848_v1 = vpop.permute.xlu1 %847  ;;  %562 = vmatprep.subr.bf16.mxu0 %v520_v0  ;;  %v846_v2 = vpop.permute.xlu0 %845  ;;  %3239 = vmatprep.subr.bf16.mxu1 %v3791_v43 }
  0xb4   :  { %v851_v3 = vsel %vm480_vm10, %v846_v2, %v848_v1  ;;  %v498_v6 = vld [vmem:[#allocation2 + $0x48] sm:$0xff] }
  0xb5   :  { %856 = vst [vmem:[#allocation2 + $0xc0] sm:$0xf] %v851_v3  ;;  %v519_v7 = vpack.c.bf16 %v498_v6, %v495_v5 }
  0xb7   :  { %v820_v8 = vpop.permute.xlu1 %819  ;;  %563 = vmatpush1.bf16.msra.mxu0 %v519_v7  ;;  %v850_v9 = vpop.permute.xlu0 %849  ;;  %v494_v10 = vld [vmem:[#allocation2 + $0x28] sm:$0xff] }
  0xb8   :  { %v492_v11 = vld [vmem:[#allocation2 + $0x18] sm:$0xff]  ;;  %v852_v12 = vsel %vm480_vm10, %v848_v1, %v850_v9  ;;  %858 = vst.msk [vmem:[#allocation2 + $0xd0] sm:$0xf] %vm367_vm3, %v850_v9  ;;  %v518_v13 = vpack.c.bf16 %v494_v10, %v3725_v47  ;;  %v493_v14 = vld [vmem:[#allocation2 + $0x20] sm:$0xff] }
  0xb9   :  { %v516_v15 = vpack.c.bf16 %v492_v11, %v3731_v49  ;;  %857 = vst [vmem:[#allocation2 + $0xc8] sm:$0xf] %v852_v12  ;;  %v517_v16 = vpack.c.bf16 %v493_v14, %v3729_v48 }
  0xba   :  { %3240 = vmatpush3.bf16.msra.mxu1 %v518_v13 }
  0xbb   :  { %v834_v17 = vpop.permute.xlu1 %833  ;;  %v822_v19 = vpop.permute.xlu0 %821  ;;  %564 = vmatprep.subr.bf16.mxu0 %v517_v16  ;;  %3245 = vmatprep.subr.bf16.mxu1 %v3791_v43 }
  0xbc   :  { %v824_v47 = vsel %vm450_vm7, %v820_v8, %v822_v19  ;;  %830 = vst.msk [vmem:[#allocation2 + $0xa0] sm:$0xf] %vm367_vm3, %v822_v19  ;;  %565 = vmatpush1.bf16.msra.mxu0 %v516_v15  ;;  %v883_v49 = vld [vmem:[#allocation2 + $0xc0] sm:$0xff] }
  0xbd   :  { %829 = vst [vmem:[#allocation2 + $0x98] sm:$0xf] %v824_v47  ;;  %3242 = vmatmul.mubr.msk.bf16.vlgmr.msra.gmra.mxu1 %vm536_vm1, %v3810_v18  ;;  %v898_v22 = vpack.c.bf16 %v883_v49, %v883_v49 }
  0xbe   :  { %3255 = vmatprep.mubr.msk.bf16.mxu1 %vm3610_vm6, %v3791_v43 }
  0xbf   :  { %v818_v48 = vpop.permute.xlu1 %817  ;;  %v836_v4 = vpop.permute.xlu0 %835  ;;  %v885_v21 = vld [vmem:[#allocation2 + $0xd0] sm:$0xff]  ;;  %2861 = vmatmul.mubr.msk.bf16.vlgmr.msra.gmra.mxu0 %vm536_vm1, %v3810_v18  ;;  %v902_v30 = vsel %vm540_vm8, %v898_v22, 0  ;;  %v859_v22 = vld [vmem:[#allocation2] sm:$0xff] }
  0xc0   :  { %v823_v20 = vsel %vm450_vm7, %v818_v48, %v820_v8  ;;  %v838_v23 = vsel %vm465_vm9, %v834_v17, %v836_v4  ;;  %844 = vst.msk [vmem:[#allocation2 + $0xb8] sm:$0xf] %vm367_vm3, %v836_v4  ;;  %v900_v24 = vpack.c.bf16 %v885_v21, %v885_v21  ;;  %v884_v25 = vld [vmem:[#allocation2 + $0xc8] sm:$0xff]  ;;  %942 = vmatprep.mubr.bf16.mxu0 %v3611_v50  ;;  %v861_v21 = vld [vmem:[#allocation2 + $0x10] sm:$0xff] }
  0xc1   :  { %828 = vst [vmem:[#allocation2 + $0x90] sm:$0xf] %v823_v20  ;;  %843 = vst [vmem:[#allocation2 + $0xb0] sm:$0xf] %v838_v23  ;;  %v899_v26 = vpack.c.bf16 %v884_v25, %v884_v25  ;;  %v860_v23 = vld [vmem:[#allocation2 + $0x8] sm:$0xff] }
  0xc2   :  { %v908_v28 = vsel %vm540_vm8, %v900_v24, 0 }
  0xc3   :  { %v792_v27 = vpop.permute.xlu1 %791  ;;  %3246 = vmatpush3.bf16.msra.mxu1 %v908_v28  ;;  %v832_v29 = vpop.permute.xlu0 %831  ;;  %2863 = vmatprep.subr.msk.bf16.mxu0 %vm540_vm8, %v899_v26  ;;  %v879_v50 = vld [vmem:[#allocation2 + $0xa0] sm:$0xff] }
  0xc4   :  { %v837_v31 = vsel %vm465_vm9, %v832_v29, %v834_v17  ;;  %917 = vmatpush1.bf16.msra.mxu0 %v902_v30  ;;  %3247 = vmatprep.subr.bf16.mxu1 %v3791_v43  ;;  %v878_v37 = vld [vmem:[#allocation2 + $0x98] sm:$0xff] }
  0xc5   :  { %842 = vst [vmem:[#allocation2 + $0xa8] sm:$0xf] %v837_v31  ;;  %v3426_v30 = vld [vmem:[%s4477_s3 + $0x78] sm:$0xff]  }
  0xc6   :  { %v3427_v31 = vld [vmem:[%s4477_s3 + $0x38] sm:$0xff]  }
  0xc7   :  { %v806_v32 = vpop.permute.xlu1 %805  ;;  %v794_v33 = vpop.permute.xlu0 %793  ;;  %v882_v34 = vld [vmem:[#allocation2 + $0xb8] sm:$0xff] }
  0xc8   :  { %v796_v35 = vsel %vm420_vm11, %v792_v27, %v794_v33  ;;  %802 = vst.msk [vmem:[#allocation2 + $0x70] sm:$0xf] %vm367_vm3, %v794_v33  ;;  %v897_v36 = vpack.c.bf16 %v882_v34, %v879_v50  ;;  %v881_v38 = vld [vmem:[#allocation2 + $0xb0] sm:$0xff]  ;;  %v3431_v50 = vld [vmem:[%s4477_s3 + $0x28] sm:$0xff]   ;;  %v3432_v34 = vld [vmem:[%s4477_s3 + $0x60] sm:$0xff]  }
  0xc9   :  { %801 = vst [vmem:[#allocation2 + $0x68] sm:$0xf] %v796_v35  ;;  %v896_v39 = vpack.c.bf16 %v881_v38, %v878_v37  ;;  %v877_v45 = vld [vmem:[#allocation2 + $0x90] sm:$0xff]  ;;  %v3433_v35 = vld [vmem:[%s4477_s3 + $0x20] sm:$0xff]   ;;  %v3435_v37 = vld [vmem:[%s4477_s3 + $0x18] sm:$0xff]  }
  0xca   :  { %3248 = vmatpush3.bf16.msra.mxu1 %v897_v36  ;;  %v3429_v33 = vld [vmem:[%s4477_s3 + $0x30] sm:$0xff]   ;;  %v3434_v36 = vld [vmem:[%s4477_s3 + $0x58] sm:$0xff]  }
  0xcb   :  { %v790_v40 = vpop.permute.xlu1 %789  ;;  %v808_v42 = vpop.permute.xlu0 %807  ;;  %918 = vmatprep.subr.bf16.mxu0 %v896_v39  ;;  %3249 = vmatprep.subr.bf16.mxu1 %v3791_v43  ;;  %v3436_v38 = vld [vmem:[%s4477_s3 + $0x50] sm:$0xff]  }
  0xcc   :  { %v795_v41 = vsel %vm420_vm11, %v790_v40, %v792_v27  ;;  %v810_v44 = vsel %vm435_vm12, %v806_v32, %v808_v42  ;;  %816 = vst.msk [vmem:[#allocation2 + $0x88] sm:$0xf] %vm367_vm3, %v808_v42  ;;  %v880_v46 = vld [vmem:[#allocation2 + $0xa8] sm:$0xff]  ;;  %v3437_v39 = vld [vmem:[%s4477_s3 + $0x10] sm:$0xff]  }
  0xcd   :  { %800 = vst [vmem:[#allocation2 + $0x60] sm:$0xf] %v795_v41  ;;  %815 = vst [vmem:[#allocation2 + $0x80] sm:$0xf] %v810_v44  ;;  %v895_v51 = vpack.c.bf16 %v880_v46, %v877_v45  ;;  %v3438_v40 = vld [vmem:[%s4477_s3 + $0x48] sm:$0xff]   ;;  %v3441_v44 = vld [vmem:[%s4477_s3 + $0x40] sm:$0xff]  }
  0xce   :  { %v3439_v41 = vld [vmem:[%s4477_s3 + $0x88] sm:$0xff]   ;;  %v3442_v45 = vld [vmem:[%s4477_s3 + $0x80] sm:$0xff]  }
  0xcf   :  { %v764_v52 = vpop.permute.xlu1 %763  ;;  %v804_v53 = vpop.permute.xlu0 %803  ;;  %919 = vmatpush1.bf16.msra.mxu0 %v895_v51  ;;  %v873_v57 = vld [vmem:[#allocation2 + $0x70] sm:$0xff]  ;;  %v3440_v42 = vld [vmem:[%s4477_s3 + $0x8] sm:$0xff]   ;;  %v3443_v51 = vld [vmem:[%s4477_s3] sm:$0xff]  }
  0xd0   :  { %v809_v54 = vsel %vm435_vm12, %v804_v53, %v806_v32  ;;  %v872_v61 = vld [vmem:[#allocation2 + $0x68] sm:$0xff]  ;;  %v3428_v32 = vld [vmem:[%s4477_s3 + $0x70] sm:$0xff]  }
  0xd1   :  { %814 = vst [vmem:[#allocation2 + $0x78] sm:$0xf] %v809_v54  ;;  %v3444_v46 = vld [vmem:[%s4477_s3 + $0x108] sm:$0xff]  }
  0xd3   :  { %v778_v55 = vpop.permute.xlu1 %777  ;;  %v766_v56 = vpop.permute.xlu0 %765  ;;  %v876_v58 = vld [vmem:[#allocation2 + $0x88] sm:$0xff] }
  0xd4   :  { %v768_v59 = vsel %vm390_vm13, %v764_v52, %v766_v56  ;;  %774 = vst.msk [vmem:[#allocation2 + $0x40] sm:$0xf] %vm367_vm3, %v766_v56  ;;  %v894_v60 = vpack.c.bf16 %v876_v58, %v873_v57  ;;  %v875_v62 = vld [vmem:[#allocation2 + $0x80] sm:$0xff] }
  0xd5   :  { %773 = vst [vmem:[#allocation2 + $0x38] sm:$0xf] %v768_v59  ;;  %v893_v63 = vpack.c.bf16 %v875_v62, %v872_v61  ;;  %v871_v5 = vld [vmem:[#allocation2 + $0x60] sm:$0xff] }
  0xd6   :  { %3250 = vmatpush3.bf16.msra.mxu1 %v894_v60 }
  0xd7   :  { %v762_v0 = vpop.permute.xlu1 %761  ;;  %v780_v2 = vpop.permute.xlu0 %779  ;;  %920 = vmatprep.subr.bf16.mxu0 %v893_v63  ;;  %3251 = vmatprep.subr.bf16.mxu1 %v3791_v43 }
  0xd8   :  { %v767_v1 = vsel %vm390_vm13, %v762_v0, %v764_v52  ;;  %v782_v3 = vsel %vm405_vm14, %v778_v55, %v780_v2  ;;  %788 = vst.msk [vmem:[#allocation2 + $0x58] sm:$0xf] %vm367_vm3, %v780_v2  ;;  %v874_v6 = vld [vmem:[#allocation2 + $0x78] sm:$0xff] }
  0xd9   :  { %772 = vst [vmem:[#allocation2 + $0x30] sm:$0xf] %v767_v1  ;;  %787 = vst [vmem:[#allocation2 + $0x50] sm:$0xf] %v782_v3  ;;  %v892_v7 = vpack.c.bf16 %v874_v6, %v871_v5 }
  0xdb   :  { %v750_v8 = vpop.permute.xlu1 %749  ;;  %v776_v9 = vpop.permute.xlu0 %775  ;;  %921 = vmatpush1.bf16.msra.mxu0 %v892_v7  ;;  %v867_v14 = vld [vmem:[#allocation2 + $0x40] sm:$0xff] }
  0xdc   :  { %v781_v10 = vsel %vm405_vm14, %v776_v9, %v778_v55  ;;  %v866_v19 = vld [vmem:[#allocation2 + $0x38] sm:$0xff] }
  0xdd   :  { %786 = vst [vmem:[#allocation2 + $0x48] sm:$0xf] %v781_v10 }
  0xdf   :  { %v748_v11 = vpop.permute.xlu1 %747  ;;  %v752_v13 = vpop.permute.xlu0 %751  ;;  %v870_v15 = vld [vmem:[#allocation2 + $0x58] sm:$0xff] }
  0xe0   :  { %v753_v12 = vsel %vm375_vm15, %v748_v11, %v750_v8  ;;  %v754_v16 = vsel %vm375_vm15, %v750_v8, %v752_v13  ;;  %760 = vst.msk [vmem:[#allocation2 + $0x28] sm:$0xf] %vm367_vm3, %v752_v13  ;;  %v891_v17 = vpack.c.bf16 %v870_v15, %v867_v14  ;;  %v869_v47 = vld [vmem:[#allocation2 + $0x50] sm:$0xff] }
  0xe1   :  { %758 = vst [vmem:[#allocation2 + $0x18] sm:$0xf] %v753_v12  ;;  %759 = vst [vmem:[#allocation2 + $0x20] sm:$0xf] %v754_v16  ;;  %v890_v49 = vpack.c.bf16 %v869_v47, %v866_v19  ;;  %v865_v48 = vld [vmem:[#allocation2 + $0x30] sm:$0xff]  ;;  %v652_v47 = vlaneseq }
  0xe2   :  { %3252 = vmatpush3.bf16.msra.mxu1 %v891_v17  ;;  %v3612_v17 = vmov 1966171168  }
  0xe3   :  { %922 = vmatprep.subr.bf16.mxu0 %v890_v49  ;;  %3253 = vmatprep.subr.bf16.mxu1 %v3791_v43  ;;  %v650_v19 = vunpack.c.l.s4 %v3612_v17  ;;  %vm3928_vm5 = vcmp.lt.s32.totalorder %v652_v47, 288 }
  0xe4   :  { %v868_v20 = vld [vmem:[#allocation2 + $0x48] sm:$0xff] }
  0xe5   :  { %v889_v4 = vpack.c.bf16 %v868_v20, %v865_v48 }
  0xe7   :  { %923 = vmatpush1.bf16.msra.mxu0 %v889_v4  ;;  %v864_v24 = vld [vmem:[#allocation2 + $0x28] sm:$0xff] }
  0xe8   :  { %v862_v25 = vld [vmem:[#allocation2 + $0x18] sm:$0xff]  ;;  %v888_v26 = vpack.c.bf16 %v864_v24, %v861_v21  ;;  %v863_v27 = vld [vmem:[#allocation2 + $0x20] sm:$0xff]  ;;  %v651_v24 = vunpack.c.0.s8 %v650_v19 }
  0xe9   :  { %v886_v28 = vpack.c.bf16 %v862_v25, %v859_v22  ;;  %v887_v29 = vpack.c.bf16 %v863_v27, %v860_v23  ;;  %v3919_v25 = vshrl.u32 %v652_v47, 7 }
  0xea   :  { %3254 = vmatpush3.bf16.msra.mxu1 %v888_v26 }
  0xeb   :  { %924 = vmatprep.subr.bf16.mxu0 %v887_v29  ;;  %3259 = vmatprep.subr.bf16.mxu1 %v3791_v43 }
  0xec   :  { %925 = vmatpush1.bf16.msra.mxu0 %v886_v28  ;;  %v3914_v52 = vpop.permute.xlu0 %533 }
  0xed   :  { %3256 = vmatmul.mubr.msk.bf16.vlgmr.msra.gmra.mxu1 %vm536_vm1, %v3810_v18  ;;  %3031 = vmatprep.subr.bf16.mxu0 %v3426_v30 }
  0xee   :  { %3263 = vmatprep.mubr.msk.bf16.mxu1 %vm3610_vm6, %v3791_v43  ;;  %3260 = vmatpush3.bf16.msra.mxu1 %v3439_v41 }
  0xef   :  { %2864 = vmatmul.mubr.msk.bf16.vlgmr.msra.gmra.mxu0 %vm536_vm1, %v3810_v18  ;;  %v3430_v18 = vld [vmem:[%s4477_s3 + $0x68] sm:$0xff]   ;;  %3261 = vmatprep.subr.bf16.mxu1 %v3791_v43 }
  0xf0   :  { %3032 = vmatpush3.bf16.msra.mxu0 %v3427_v31 }
  0xf1   :  { %3033 = vmatprep.subr.bf16.mxu0 %v3428_v32 }
  0xf2   :  { %3262 = vmatpush3.bf16.msra.mxu1 %v3442_v45 }
  0xf3   :  { %3056 = vmatprep.subr.bf16.mxu1 %v3444_v46 }
  0xf4   :  { %3034 = vmatpush3.bf16.msra.mxu0 %v3429_v33  ;;  %v3922_v33 = vsub.s32 %v651_v24, %v3919_v25 }
  0xf5   :  { %3035 = vmatprep.subr.bf16.mxu0 %v3430_v18 }
  0xf8   :  { %3036 = vmatpush3.bf16.msra.mxu0 %v3431_v50 }
  0xf9   :  { %3037 = vmatprep.subr.bf16.mxu0 %v3432_v34 }
  0xfc   :  { %3038 = vmatpush3.bf16.msra.mxu0 %v3433_v35 }
  0xfd   :  { %3039 = vmatprep.subr.bf16.mxu0 %v3434_v36 }
 0x100   :  { %3040 = vmatpush3.bf16.msra.mxu0 %v3435_v37 }
 0x101   :  { %3041 = vmatprep.subr.bf16.mxu0 %v3436_v38 }
 0x104   :  { %3042 = vmatpush3.bf16.msra.mxu0 %v3437_v39 }
 0x105   :  { %3043 = vmatprep.subr.bf16.mxu0 %v3438_v40 }
 0x108   :  { %3044 = vmatpush3.bf16.msra.mxu0 %v3440_v42 }
 0x109   :  { %3045 = vmatprep.subr.bf16.mxu0 %v3441_v44 }
 0x10c   :  { %3046 = vmatpush3.bf16.msra.mxu0 %v3443_v51 }
 0x10d   :  { %3267 = vmatprep.subr.bf16.mxu0 %v3791_v43 }
 0x17d   :  { %v625_v53 = vpop.f32.mrf.mxu1 }
 0x17e   :  { %v626_v54 = vadd.f32 %v625_v53, %v3914_v52 }
 0x17f   :  { %v584_v55 = vpop.f32.mrf.mxu0  ;;  %v3243_v56 = vpop.f32.mrf.mxu1 }
 0x180   :  { %v585_v57 = vadd.f32 %v584_v55, %v3914_v52  ;;  %v3373_v58 = vcvt.f32.s32 %v626_v54  ;;  %v3371_v62 = vand.u32 2147483647, %v626_v54  ;;  %v3376_v1 = vand.u32 2147483648, %v626_v54 }
 0x181   :  { %v586_v59 = vpop.f32.mrf.mxu0  ;;  %v628_v60 = vpop.f32.mrf.mxu1 }
 0x182   :  { %v3357_v61 = vcvt.f32.s32 %v585_v57  ;;  %v3355_v63 = vand.u32 2147483647, %v585_v57  ;;  %v3374_v0 = vcvt.s32.f32 %v3373_v58  ;;  %v587_v2 = vadd.f32 %v586_v59, %v3914_v52 }
 0x183   :  { %v588_v3 = vpop.f32.mrf.mxu0  ;;  %v3244_v5 = vpop.f32.mrf.mxu1  ;;  %v3360_v7 = vand.u32 2147483648, %v585_v57  ;;  %vm3372_vm2 = vcmp.lt.f32.partialorder %v3371_v62, 8388608.0 }
 0x184   :  { %v3358_v6 = vcvt.s32.f32 %v3357_v61  ;;  %v3375_v8 = vand.u32 2147483647, %v3374_v0  ;;  %v3365_v9 = vcvt.f32.s32 %v587_v2  ;;  %v3363_v12 = vand.u32 2147483647, %v587_v2 }
 0x185   :  { %v589_v10 = vpop.f32.mrf.mxu0  ;;  %vm3356_vm3 = vcmp.lt.f32.partialorder %v3355_v63, 8388608.0  ;;  %v3368_v15 = vand.u32 2147483648, %v587_v2 }
 0x186   :  { %v3359_v11 = vand.u32 2147483647, %v3358_v6  ;;  %v3377_v13 = vor.u32 %v3376_v1, %v3375_v8  ;;  %v3366_v14 = vcvt.s32.f32 %v3365_v9  ;;  %vm3364_vm4 = vcmp.lt.f32.partialorder %v3363_v12, 8388608.0 }
 0x188   :  { %v3361_v16 = vor.u32 %v3360_v7, %v3359_v11  ;;  %v3378_v49 = vsel %vm3372_vm2, %v3377_v13, %v626_v54  ;;  %v3367_v48 = vand.u32 2147483647, %v3366_v14 }
 0x189   :  { %v636_v20 = vmax.f32 %v3378_v49, -128.0 }
 0x18a   :  { %v3362_v4 = vsel %vm3356_vm3, %v3361_v16, %v585_v57  ;;  %v3369_v21 = vor.u32 %v3368_v15, %v3367_v48 }
 0x18b   :  { %v634_v22 = vmax.f32 %v3362_v4, -128.0  ;;  %v639_v23 = vmin.f32 %v636_v20, 127.0 }
 0x18c   :  { %v3370_v26 = vsel %vm3364_vm4, %v3369_v21, %v587_v2 }
 0x18d   :  { %v637_v27 = vmin.f32 %v634_v22, 127.0  ;;  %v642_v28 = vmax.f32 %v639_v23, 0.0  ;;  %v635_v29 = vmax.f32 %v3370_v26, -128.0 }
 0x18f   :  { %v638_v30 = vmin.f32 %v635_v29, 127.0  ;;  %v640_v31 = vmax.f32 %v637_v27, 0.0  ;;  %v648_v32 = vcombine.high %v642_v28, %v642_v28  ;;  %v669_v35 = vrot.slane %v642_v28, %v3922_v33 }
 0x191   :  { %v641_v18 = vmax.f32 %v638_v30, 0.0  ;;  %v676_v36 = vrot.slane %v648_v32, %v3922_v33 }
 0x193   :  { %v646_v50 = vcombine.low %v640_v31, %v641_v18  ;;  %v647_v34 = vcombine.high %v640_v31, %v641_v18 }
 0x195   :  { %v655_v37 = vrot.slane %v646_v50, %v3922_v33  ;;  %v662_v38 = vrot.slane %v647_v34, %v3922_v33 }
 0x197   :  { %v677_v39 = vcombine.low %v655_v37, %v669_v35  ;;  %v678_v40 = vcombine.high %v655_v37, %v669_v35  ;;  %v679_v41 = vcombine.low %v662_v38, %v676_v36  ;;  %v680_v42 = vcombine.high %v662_v38, %v676_v36 }
 0x199   :  { %v687_v45 = vrot.slane %v677_v39, %v3922_v33  ;;  %v694_v46 = vrot.slane %v679_v41, %v3922_v33  ;;  %v701_v51 = vrot.slane %v678_v40, %v3922_v33  ;;  %v708_v53 = vrot.slane %v680_v42, %v3922_v33 }
 0x19a   :  { %v3613_v39 = vmov 1983009808  }
 0x19b   :  { %v709_v54 = vcombine.high %v687_v45, %v687_v45  ;;  %v710_v55 = vcombine.high %v694_v46, %v694_v46  ;;  %v711_v56 = vcombine.high %v701_v51, %v701_v51  ;;  %v712_v57 = vcombine.high %v708_v53, %v708_v53  ;;  %725 = vst.msk [vmem:[#allocation3] ss:$2 sm:$0x7] %vm3928_vm5, %v687_v45 }
 0x19c   :  { %727 = vst.msk [vmem:[#allocation3 + $0x6] ss:$2 sm:$0x7] %vm3928_vm5, %v701_v51  ;;  %733 = vst.msk [vmem:[#allocation3 + $0x18] ss:$2 sm:$0x7] %vm3928_vm5, %v694_v46  ;;  %v1115_v40 = vunpack.c.l.s4 %v3613_v39 }
 0x19d   :  { %735 = vst.msk [vmem:[#allocation3 + $0x1e] ss:$2 sm:$0x7] %vm3928_vm5, %v708_v53  ;;  %729 = vst.msk [vmem:[#allocation3 + $0xc] ss:$2 sm:$0x7] %vm3928_vm5, %v709_v54 }
 0x19e   :  { %731 = vst.msk [vmem:[#allocation3 + $0x12] ss:$2 sm:$0x7] %vm3928_vm5, %v711_v56  ;;  %737 = vst.msk [vmem:[#allocation3 + $0x24] ss:$2 sm:$0x7] %vm3928_vm5, %v710_v55  ;;  %v1116_v56 = vunpack.c.0.s8 %v1115_v40 }
 0x19f   :  { %739 = vst.msk [vmem:[#allocation3 + $0x2a] ss:$2 sm:$0x7] %vm3928_vm5, %v712_v57  ;;  %v3476_v39 = vld [vmem:[%s4477_s3 + $0x130] sm:$0xff]   ;;  %v3477_v40 = vld [vmem:[%s4477_s3 + $0x168] sm:$0xff]  }
 0x1ad   :  { %v985_v58 = vpop.f32.mrf.mxu1 }
 0x1ae   :  { %v986_v59 = vadd.f32 %v985_v58, %v3914_v52 }
 0x1af   :  { %v944_v60 = vpop.f32.mrf.mxu0  ;;  %v3257_v61 = vpop.f32.mrf.mxu1 }
 0x1b0   :  { %v3397_v62 = vcvt.f32.s32 %v986_v59  ;;  %v945_v63 = vadd.f32 %v944_v60, %v3914_v52  ;;  %v3395_v0 = vand.u32 2147483647, %v986_v59  ;;  %v3400_v5 = vand.u32 2147483648, %v986_v59 }
 0x1b1   :  { %v946_v1 = vpop.f32.mrf.mxu0  ;;  %v988_v2 = vpop.f32.mrf.mxu1 }
 0x1b2   :  { %v3398_v3 = vcvt.s32.f32 %v3397_v62  ;;  %v3381_v6 = vcvt.f32.s32 %v945_v63  ;;  %v947_v7 = vadd.f32 %v946_v1, %v3914_v52  ;;  %vm3396_vm7 = vcmp.lt.f32.partialorder %v3395_v0, 8388608.0 }
 0x1b3   :  { %v948_v8 = vpop.f32.mrf.mxu0  ;;  %v3258_v9 = vpop.f32.mrf.mxu1  ;;  %v3379_v12 = vand.u32 2147483647, %v945_v63  ;;  %v3384_v17 = vand.u32 2147483648, %v945_v63 }
 0x1b4   :  { %v3399_v10 = vand.u32 2147483647, %v3398_v3  ;;  %v3382_v11 = vcvt.s32.f32 %v3381_v6  ;;  %v3389_v13 = vcvt.f32.s32 %v947_v7  ;;  %v3387_v48 = vand.u32 2147483647, %v947_v7  ;;  %v3448_v8 = vld [vmem:[%s4477_s3 + $0x118] sm:$0xff]  }
 0x1b5   :  { %v949_v14 = vpop.f32.mrf.mxu0  ;;  %vm3380_vm8 = vcmp.lt.f32.partialorder %v3379_v12, 8388608.0  ;;  %v3392_v21 = vand.u32 2147483648, %v947_v7  ;;  %v3449_v12 = vld [vmem:[%s4477_s3 + $0x100] sm:$0xff]  }
 0x1b6   :  { %v3401_v15 = vor.u32 %v3400_v5, %v3399_v10  ;;  %v3383_v16 = vand.u32 2147483647, %v3382_v11  ;;  %v3390_v19 = vcvt.s32.f32 %v3389_v13  ;;  %vm3388_vm9 = vcmp.lt.f32.partialorder %v3387_v48, 8388608.0  ;;  %v3446_v5 = vld [vmem:[%s4477_s3 + $0xc8] sm:$0xff]   ;;  %v3450_v14 = vld [vmem:[%s4477_s3 + $0xc0] sm:$0xff]   ;;  %v3455_v48 = vld [vmem:[%s4477_s3 + $0x158] sm:$0xff]  }
 0x1b8   :  { %v3402_v47 = vsel %vm3396_vm7, %v3401_v15, %v986_v59  ;;  %v3385_v49 = vor.u32 %v3384_v17, %v3383_v16  ;;  %v3391_v4 = vand.u32 2147483647, %v3390_v19  ;;  %v3451_v15 = vld [vmem:[%s4477_s3 + $0x110] sm:$0xff]   ;;  %v3452_v16 = vld [vmem:[%s4477_s3 + $0xf8] sm:$0xff]  }
 0x1b9   :  { %v996_v20 = vmax.f32 %v3402_v47, -128.0  ;;  %v3454_v19 = vld [vmem:[%s4477_s3 + $0x198] sm:$0xff]  }
 0x1ba   :  { %v3386_v52 = vsel %vm3380_vm8, %v3385_v49, %v945_v63  ;;  %v3393_v24 = vor.u32 %v3392_v21, %v3391_v4  ;;  %v3453_v49 = vld [vmem:[%s4477_s3 + $0xb8] sm:$0xff]   ;;  %v3457_v4 = vld [vmem:[%s4477_s3 + $0xf0] sm:$0xff]  }
 0x1bb   :  { %v999_v22 = vmin.f32 %v996_v20, 127.0  ;;  %v994_v23 = vmax.f32 %v3386_v52, -128.0  ;;  %v3459_v21 = vld [vmem:[%s4477_s3 + $0x190] sm:$0xff]  }
 0x1bc   :  { %v3394_v26 = vsel %vm3388_vm9, %v3393_v24, %v947_v7  ;;  %v3461_v24 = vld [vmem:[%s4477_s3 + $0xe8] sm:$0xff]  }
 0x1bd   :  { %v1002_v27 = vmax.f32 %v999_v22, 0.0  ;;  %v997_v28 = vmin.f32 %v994_v23, 127.0  ;;  %v995_v29 = vmax.f32 %v3394_v26, -128.0  ;;  %v3458_v22 = vld [vmem:[%s4477_s3 + $0xb0] sm:$0xff]   ;;  %v3463_v26 = vld [vmem:[%s4477_s3 + $0x188] sm:$0xff]  }
 0x1be   :  { %v3460_v23 = vld [vmem:[%s4477_s3 + $0x150] sm:$0xff]  }
 0x1bf   :  { %v998_v30 = vmin.f32 %v995_v29, 127.0  ;;  %v1008_v31 = vcombine.high %v1002_v27, %v1002_v27  ;;  %v1000_v32 = vmax.f32 %v997_v28, 0.0  ;;  %v1029_v35 = vrot.slane %v1002_v27, %v3922_v33  ;;  %v3462_v27 = vld [vmem:[%s4477_s3 + $0xa8] sm:$0xff]   ;;  %v3465_v29 = vld [vmem:[%s4477_s3 + $0xe0] sm:$0xff]  }
 0x1c0   :  { %v3464_v28 = vld [vmem:[%s4477_s3 + $0x148] sm:$0xff]  }
 0x1c1   :  { %v1001_v18 = vmax.f32 %v998_v30, 0.0  ;;  %v1036_v36 = vrot.slane %v1008_v31, %v3922_v33  ;;  %v3467_v30 = vld [vmem:[%s4477_s3 + $0x180] sm:$0xff]  }
 0x1c2   :  { %v3466_v31 = vld [vmem:[%s4477_s3 + $0xa0] sm:$0xff]  }
 0x1c3   :  { %v1006_v50 = vcombine.low %v1000_v32, %v1001_v18  ;;  %v1007_v34 = vcombine.high %v1000_v32, %v1001_v18  ;;  %v3468_v32 = vld [vmem:[%s4477_s3 + $0x140] sm:$0xff]   ;;  %v3469_v18 = vld [vmem:[%s4477_s3 + $0xd8] sm:$0xff]  }
 0x1c5   :  { %v1015_v37 = vrot.slane %v1006_v50, %v3922_v33  ;;  %v1022_v38 = vrot.slane %v1007_v34, %v3922_v33  ;;  %v3471_v50 = vld [vmem:[%s4477_s3 + $0x178] sm:$0xff]  }
 0x1c6   :  { %v3470_v34 = vld [vmem:[%s4477_s3 + $0x98] sm:$0xff]  }
 0x1c7   :  { %v1037_v41 = vcombine.low %v1015_v37, %v1029_v35  ;;  %v1038_v42 = vcombine.high %v1015_v37, %v1029_v35  ;;  %v1039_v45 = vcombine.low %v1022_v38, %v1036_v36  ;;  %v1040_v46 = vcombine.high %v1022_v38, %v1036_v36  ;;  %v3472_v35 = vld [vmem:[%s4477_s3 + $0x138] sm:$0xff]   ;;  %v3473_v36 = vld [vmem:[%s4477_s3 + $0xd0] sm:$0xff]  }
 0x1c8   :  { %v3475_v37 = vld [vmem:[%s4477_s3 + $0x170] sm:$0xff]  }
 0x1c9   :  { %v1047_v51 = vrot.slane %v1037_v41, %v3922_v33  ;;  %v1054_v53 = vrot.slane %v1039_v45, %v3922_v33  ;;  %v1061_v54 = vrot.slane %v1038_v42, %v3922_v33  ;;  %v1068_v55 = vrot.slane %v1040_v46, %v3922_v33  ;;  %v3474_v38 = vld [vmem:[%s4477_s3 + $0x90] sm:$0xff]   ;;  %v3478_v41 = vld [vmem:[%s4477_s3 + $0x1a8] sm:$0xff]  }
 0x1ca   :  { %v3980_v33 = vsub.s32 %v1116_v56, %v3919_v25 }
 0x1cb   :  { %v1069_v57 = vcombine.high %v1047_v51, %v1047_v51  ;;  %v1070_v58 = vcombine.high %v1054_v53, %v1054_v53  ;;  %v1071_v59 = vcombine.high %v1061_v54, %v1061_v54  ;;  %v1072_v60 = vcombine.high %v1068_v55, %v1068_v55  ;;  %1082 = vst.msk [vmem:[#allocation3 + $0x1] ss:$2 sm:$0x7] %vm3928_vm5, %v1047_v51  ;;  %v3479_v51 = vld [vmem:[%s4477_s3 + $0x128] sm:$0xff]  }
 0x1cc   :  { %1084 = vst.msk [vmem:[#allocation3 + $0x7] ss:$2 sm:$0x7] %vm3928_vm5, %v1061_v54  ;;  %1090 = vst.msk [vmem:[#allocation3 + $0x19] ss:$2 sm:$0x7] %vm3928_vm5, %v1054_v53 }
 0x1cd   :  { %1092 = vst.msk [vmem:[#allocation3 + $0x1f] ss:$2 sm:$0x7] %vm3928_vm5, %v1068_v55  ;;  %1086 = vst.msk [vmem:[#allocation3 + $0xd] ss:$2 sm:$0x7] %vm3928_vm5, %v1069_v57 }
 0x1ce   :  { %1088 = vst.msk [vmem:[#allocation3 + $0x13] ss:$2 sm:$0x7] %vm3928_vm5, %v1071_v59  ;;  %1094 = vst.msk [vmem:[#allocation3 + $0x25] ss:$2 sm:$0x7] %vm3928_vm5, %v1070_v58 }
 0x1cf   :  { %1096 = vst.msk [vmem:[#allocation3 + $0x2b] ss:$2 sm:$0x7] %vm3928_vm5, %v1072_v60  ;;  %v3480_v53 = vld [vmem:[%s4477_s3 + $0x160] sm:$0xff]   ;;  %v3483_v58 = vld [vmem:[%s4477_s3 + $0x228] sm:$0xff]  }
 0x1d0   :  { %v3481_v55 = vld [vmem:[%s4477_s3 + $0x1a0] sm:$0xff]   ;;  %v3484_v60 = vld [vmem:[%s4477_s3 + $0x1e8] sm:$0xff]  }
 0x1d1   :  { %v3482_v57 = vld [vmem:[%s4477_s3 + $0x120] sm:$0xff]  }
 0x1d2   :  { %v1097_v61 = vld [vmem:[#allocation3] sm:$0x3f] }
 0x1d3   :  { %v1098_v62 = vld [vmem:[#allocation3 + $0x6] sm:$0x3f]  ;;  %v1113_v63 = vcombine.high %v1097_v61, %v1097_v61  ;;  %v1120_v0 = vrot.slane %v1097_v61, %v3980_v33  ;;  %v4128_v61 = vld [vmem:[#allocation3 + $0x18] sm:$0x3f] }
 0x1d4   :  { %v3984_v1 = vrot.slane %v1098_v62, %v3980_v33  ;;  %v3992_v25 = vld [vmem:[#allocation3 + $0xc] sm:$0x3f]  ;;  %v1129_v10 = vcombine.high %v1098_v62, %v1098_v62 }
 0x1d5   :  { %v1127_v2 = vrot.slane %v1113_v63, %v3980_v33  ;;  %v1128_v3 = vcombine.high %v1120_v0, %v1120_v0  ;;  %v1265_v9 = vpack.c.bf16 %v1120_v0, %v1120_v0  ;;  %v4003_v13 = vrot.slane %v3992_v25, %v3980_v33  ;;  %v1100_v42 = vld [vmem:[#allocation3 + $0x12] sm:$0x3f]  ;;  %v3486_v63 = vld [vmem:[%s4477_s3 + $0x238] sm:$0xff]  }
 0x1d6   :  { %v1144_v44 = vcombine.high %v3984_v1, %v3984_v1  ;;  %v1143_v17 = vrot.slane %v1129_v10, %v3980_v33  ;;  %v1145_v45 = vcombine.high %v3992_v25, %v3992_v25  ;;  %v1268_v46 = vpack.c.bf16 %v3984_v1, %v3984_v1  ;;  %v3489_v25 = vld [vmem:[%s4477_s3 + $0x230] sm:$0xff]   ;;  %v3491_v10 = vld [vmem:[%s4477_s3 + $0x1d8] sm:$0xff]  }
 0x1d7   :  { %v1266_v6 = vpack.c.bf16 %v1128_v3, %v1128_v3  ;;  %v1267_v7 = vpack.c.bf16 %v1127_v2, %v1127_v2  ;;  %v1160_v47 = vcombine.high %v4003_v13, %v4003_v13  ;;  %v4108_v54 = vrot.slane %v1100_v42, %v3980_v33  ;;  %v3487_v2 = vld [vmem:[%s4477_s3 + $0x220] sm:$0xff]  }
 0x1d8   :  { %v1269_v11 = vpack.c.bf16 %v1144_v44, %v1144_v44  ;;  %v1270_v20 = vpack.c.bf16 %v1143_v17, %v1143_v17  ;;  %v1159_v56 = vrot.slane %v1145_v45, %v3980_v33  ;;  %v1271_v0 = vpack.c.bf16 %v4003_v13, %v4003_v13  ;;  %v3488_v44 = vld [vmem:[%s4477_s3 + $0x1e0] sm:$0xff]   ;;  %v3495_v13 = vld [vmem:[%s4477_s3 + $0x210] sm:$0xff]   ;;  %v3522_v45 = vld [vmem:[%s4477_s3 + $0x308] sm:$0xff]  }
 0x1d9   :  { %1432 = vmatprep.mubr.bf16.mxu0 %v1266_v6  ;;  %3264 = vmatmul.mubr.msk.bf16.vlgmr.msra.gmra.mxu1 %vm335_vm0, %v1267_v7  ;;  %v1272_v52 = vpack.c.bf16 %v1160_v47, %v1160_v47  ;;  %v1176_v59 = vcombine.high %v4108_v54, %v4108_v54  ;;  %v1161_v1 = vcombine.high %v1100_v42, %v1100_v42  ;;  %v3490_v6 = vld [vmem:[%s4477_s3 + $0x218] sm:$0xff]   ;;  %v3498_v17 = vld [vmem:[%s4477_s3 + $0x270] sm:$0xff]   ;;  %v3501_v47 = vld [vmem:[%s4477_s3 + $0x2a8] sm:$0xff]  }
 0x1da   :  { %3057 = vmatpush3.bf16.msra.mxu1 %v3446_v5  ;;  %1433 = vmatmul.mubr.bf16.vlgmr.msra.gmra.mxu0 %v1265_v9  ;;  %v1273_v62 = vpack.c.bf16 %v1159_v56, %v1159_v56  ;;  %v4142_v5 = vrot.slane %v4128_v61, %v3980_v33  ;;  %v3525_v56 = vld [vmem:[%s4477_s3 + $0x340] sm:$0xff]  }
 0x1db   :  { %1623 = vmatprep.mubr.bf16.mxu1 %v1269_v11  ;;  %3268 = vmatpush3.bf16.msra.mxu0 %v3448_v8  ;;  %v1275_v3 = vpack.c.bf16 %v1176_v59, %v1176_v59  ;;  %v1175_v7 = vrot.slane %v1161_v1, %v3980_v33  ;;  %v3492_v8 = vld [vmem:[%s4477_s3 + $0x2b8] sm:$0xff]   ;;  %v3526_v59 = vld [vmem:[%s4477_s3 + $0x300] sm:$0xff]  }
 0x1dc   :  { %3058 = vmatprep.subr.bf16.mxu1 %v3449_v12  ;;  %3269 = vmatprep.subr.bf16.mxu0 %v3791_v43  ;;  %v1192_v9 = vcombine.high %v4142_v5, %v4142_v5  ;;  %v3493_v11 = vld [vmem:[%s4477_s3 + $0x278] sm:$0xff]  }
 0x1dd   :  { %3271 = vmatprep.mubr.msk.bf16.mxu0 %vm3610_vm6, %v3791_v43  ;;  %v1276_v12 = vpack.c.bf16 %v1175_v7, %v1175_v7  ;;  %v3529_v1 = vld [vmem:[%s4477_s3 + $0x2f8] sm:$0xff]   ;;  %v3536_v7 = vld [vmem:[%s4477_s3 + $0x390] sm:$0xff]  }
 0x1de   :  { %3059 = vmatpush3.bf16.msra.mxu1 %v3450_v14  ;;  %v3497_v14 = vld [vmem:[%s4477_s3 + $0x2b0] sm:$0xff]  }
 0x1df   :  { %3270 = vmatpush3.bf16.msra.mxu0 %v3451_v15  ;;  %3060 = vmatprep.subr.bf16.mxu1 %v3452_v16  ;;  %v1278_v15 = vpack.c.bf16 %v1192_v9, %v1192_v9  ;;  %v3496_v16 = vld [vmem:[%s4477_s3 + $0x1d0] sm:$0xff]   ;;  %v3539_v9 = vld [vmem:[%s4477_s3 + $0x3c8] sm:$0xff]  }
 0x1e0   :  { %3081 = vmatprep.subr.bf16.mxu0 %v3454_v19  ;;  %v3499_v19 = vld [vmem:[%s4477_s3 + $0x208] sm:$0xff]  }
 0x1e2   :  { %3061 = vmatpush3.bf16.msra.mxu1 %v3453_v49  ;;  %3272 = vmatmul.mubr.msk.bf16.vlgmr.msra.gmra.mxu0 %vm335_vm0, %v1270_v20  ;;  %v3500_v49 = vld [vmem:[%s4477_s3 + $0x1c8] sm:$0xff]   ;;  %v3503_v20 = vld [vmem:[%s4477_s3 + $0x200] sm:$0xff]  }
 0x1e3   :  { %3082 = vmatpush3.bf16.msra.mxu0 %v3455_v48  ;;  %1814 = vmatprep.mubr.bf16.mxu0 %v1272_v52  ;;  %v3502_v48 = vld [vmem:[%s4477_s3 + $0x268] sm:$0xff]   ;;  %v3506_v52 = vld [vmem:[%s4477_s3 + $0x260] sm:$0xff]  }
 0x1e4   :  { %3062 = vmatprep.subr.bf16.mxu1 %v3457_v4  ;;  %3083 = vmatprep.subr.bf16.mxu0 %v3459_v21  ;;  %v3505_v4 = vld [vmem:[%s4477_s3 + $0x2a0] sm:$0xff]  }
 0x1e5   :  { %v3504_v21 = vld [vmem:[%s4477_s3 + $0x1c0] sm:$0xff]  }
 0x1e6   :  { %3063 = vmatpush3.bf16.msra.mxu1 %v3458_v22  ;;  %v3507_v22 = vld [vmem:[%s4477_s3 + $0x1f8] sm:$0xff]  }
 0x1e7   :  { %3084 = vmatpush3.bf16.msra.mxu0 %v3460_v23  ;;  %3064 = vmatprep.subr.bf16.mxu1 %v3461_v24  ;;  %v3509_v23 = vld [vmem:[%s4477_s3 + $0x298] sm:$0xff]  }
 0x1e8   :  { %3085 = vmatprep.subr.bf16.mxu0 %v3463_v26  ;;  %v3508_v24 = vld [vmem:[%s4477_s3 + $0x1b8] sm:$0xff]  }
 0x1e9   :  { %v3510_v26 = vld [vmem:[%s4477_s3 + $0x258] sm:$0xff]  }
 0x1ea   :  { %3065 = vmatpush3.bf16.msra.mxu1 %v3462_v27  ;;  %v3511_v27 = vld [vmem:[%s4477_s3 + $0x1f0] sm:$0xff]  }
 0x1eb   :  { %3086 = vmatpush3.bf16.msra.mxu0 %v3464_v28  ;;  %3066 = vmatprep.subr.bf16.mxu1 %v3465_v29  ;;  %v3513_v28 = vld [vmem:[%s4477_s3 + $0x290] sm:$0xff]  }
 0x1ec   :  { %3087 = vmatprep.subr.bf16.mxu0 %v3467_v30  ;;  %v3512_v29 = vld [vmem:[%s4477_s3 + $0x1b0] sm:$0xff]  }
 0x1ed   :  { %v3514_v30 = vld [vmem:[%s4477_s3 + $0x250] sm:$0xff]  }
 0x1ee   :  { %3067 = vmatpush3.bf16.msra.mxu1 %v3466_v31  ;;  %v3515_v31 = vld [vmem:[%s4477_s3 + $0x288] sm:$0xff]  }
 0x1ef   :  { %3088 = vmatpush3.bf16.msra.mxu0 %v3468_v32  ;;  %3068 = vmatprep.subr.bf16.mxu1 %v3469_v18  ;;  %v3516_v32 = vld [vmem:[%s4477_s3 + $0x2c8] sm:$0xff]   ;;  %v1102_v18 = vld [vmem:[#allocation3 + $0x1e] sm:$0x3f] }
 0x1f0   :  { %3089 = vmatprep.subr.bf16.mxu0 %v3471_v50  ;;  %v1177_v50 = vcombine.high %v4128_v61, %v4128_v61  ;;  %v3528_v61 = vld [vmem:[%s4477_s3 + $0x338] sm:$0xff]  }
 0x1f2   :  { %3069 = vmatpush3.bf16.msra.mxu1 %v3470_v34  ;;  %v1274_v34 = vpack.c.bf16 %v4108_v54, %v4108_v54  ;;  %v1277_v54 = vpack.c.bf16 %v4142_v5, %v4142_v5  ;;  %v3533_v5 = vld [vmem:[%s4477_s3 + $0x330] sm:$0xff]  }
 0x1f3   :  { %3090 = vmatpush3.bf16.msra.mxu0 %v3472_v35  ;;  %3070 = vmatprep.subr.bf16.mxu1 %v3473_v36  ;;  %v3517_v35 = vld [vmem:[%s4477_s3 + $0x248] sm:$0xff]   ;;  %v3518_v36 = vld [vmem:[%s4477_s3 + $0x280] sm:$0xff]  }
 0x1f4   :  { %3091 = vmatprep.subr.bf16.mxu0 %v3475_v37  ;;  %v4247_v37 = vrot.slane %v1102_v18, %v3980_v33 }
 0x1f6   :  { %3071 = vmatpush3.bf16.msra.mxu1 %v3474_v38  ;;  %v3519_v38 = vld [vmem:[%s4477_s3 + $0x2c0] sm:$0xff]   ;;  %v1208_v42 = vcombine.high %v4247_v37, %v4247_v37 }
 0x1f7   :  { %3092 = vmatpush3.bf16.msra.mxu0 %v3476_v39  ;;  %3275 = vmatprep.subr.bf16.mxu1 %v3791_v43  ;;  %v1191_v39 = vrot.slane %v1177_v50, %v3980_v33  ;;  %v3560_v50 = vld [vmem:[%s4477_s3 + $0x428] sm:$0xff]  }
 0x1f8   :  { %3093 = vmatprep.subr.bf16.mxu0 %v3477_v40  ;;  %v3520_v40 = vld [vmem:[%s4477_s3 + $0x240] sm:$0xff]  }
 0x1f9   :  { %1624 = vmatmul.mubr.bf16.vlgmr.msra.gmra.mxu1 %v1268_v46  ;;  %v4267_v46 = vld [vmem:[#allocation3 + $0x24] sm:$0x3f] }
 0x1fa   :  { %3276 = vmatpush3.bf16.msra.mxu1 %v3478_v41  ;;  %3279 = vmatprep.mubr.msk.bf16.mxu1 %vm3610_vm6, %v3791_v43  ;;  %v3521_v41 = vld [vmem:[%s4477_s3 + $0x348] sm:$0xff]  }
 0x1fb   :  { %3094 = vmatpush3.bf16.msra.mxu0 %v3479_v51  ;;  %3277 = vmatprep.subr.bf16.mxu1 %v3791_v43  ;;  %v1279_v51 = vpack.c.bf16 %v1191_v39, %v1191_v39 }
 0x1fc   :  { %3095 = vmatprep.subr.bf16.mxu0 %v3480_v53  ;;  %v3524_v53 = vld [vmem:[%s4477_s3 + $0x358] sm:$0xff]  }
 0x1fe   :  { %3278 = vmatpush3.bf16.msra.mxu1 %v3481_v55  ;;  %v1193_v55 = vcombine.high %v1102_v18, %v1102_v18 }
 0x1ff   :  { %3096 = vmatpush3.bf16.msra.mxu0 %v3482_v57  ;;  %3106 = vmatprep.subr.bf16.mxu1 %v3483_v58  ;;  %v1281_v57 = vpack.c.bf16 %v1208_v42, %v1208_v42  ;;  %v4281_v58 = vrot.slane %v4267_v46, %v3980_v33  ;;  %v3566_v42 = vld [vmem:[%s4477_s3 + $0x458] sm:$0xff]  }
 0x200   :  { %3283 = vmatprep.subr.bf16.mxu0 %v3791_v43 }
 0x201   :  { %3280 = vmatmul.mubr.msk.bf16.vlgmr.msra.gmra.mxu1 %vm335_vm0, %v1273_v62  ;;  %v1207_v62 = vrot.slane %v1193_v55, %v3980_v33  ;;  %v3572_v55 = vld [vmem:[%s4477_s3 + $0x440] sm:$0xff]  }
 0x202   :  { %1815 = vmatmul.mubr.bf16.vlgmr.msra.gmra.mxu0 %v1271_v0  ;;  %3107 = vmatpush3.bf16.msra.mxu1 %v3484_v60  ;;  %v3527_v60 = vld [vmem:[%s4477_s3 + $0x350] sm:$0xff]   ;;  %v1224_v0 = vcombine.high %v4281_v58, %v4281_v58 }
 0x203   :  { %2005 = vmatprep.mubr.bf16.mxu1 %v1275_v3  ;;  %3284 = vmatpush3.bf16.msra.mxu0 %v3486_v63  ;;  %v3530_v63 = vld [vmem:[%s4477_s3 + $0x3d8] sm:$0xff]   ;;  %v1282_v3 = vpack.c.bf16 %v1207_v62, %v1207_v62 }
 0x204   :  { %3108 = vmatprep.subr.bf16.mxu1 %v3487_v2  ;;  %3285 = vmatprep.subr.bf16.mxu0 %v3791_v43  ;;  %v3531_v2 = vld [vmem:[%s4477_s3 + $0x398] sm:$0xff]  }
 0x205   :  { %3287 = vmatprep.mubr.msk.bf16.mxu0 %vm3610_vm6, %v3791_v43 }
 0x206   :  { %3109 = vmatpush3.bf16.msra.mxu1 %v3488_v44  ;;  %v3535_v44 = vld [vmem:[%s4477_s3 + $0x3d0] sm:$0xff]  }
 0x207   :  { %3286 = vmatpush3.bf16.msra.mxu0 %v3489_v25  ;;  %3110 = vmatprep.subr.bf16.mxu1 %v3490_v6  ;;  %v1284_v25 = vpack.c.bf16 %v1224_v0, %v1224_v0  ;;  %v3534_v6 = vld [vmem:[%s4477_s3 + $0x2f0] sm:$0xff]  }
 0x208   :  { %3131 = vmatprep.subr.bf16.mxu0 %v3492_v8  ;;  %v3537_v8 = vld [vmem:[%s4477_s3 + $0x328] sm:$0xff]  }
 0x20a   :  { %3111 = vmatpush3.bf16.msra.mxu1 %v3491_v10  ;;  %3288 = vmatmul.mubr.msk.bf16.vlgmr.msra.gmra.mxu0 %vm335_vm0, %v1276_v12  ;;  %v3538_v10 = vld [vmem:[%s4477_s3 + $0x2e8] sm:$0xff]   ;;  %v3541_v12 = vld [vmem:[%s4477_s3 + $0x320] sm:$0xff]  }
 0x20b   :  { %3132 = vmatpush3.bf16.msra.mxu0 %v3493_v11  ;;  %2196 = vmatprep.mubr.bf16.mxu0 %v1278_v15  ;;  %v3540_v11 = vld [vmem:[%s4477_s3 + $0x388] sm:$0xff]   ;;  %v3544_v15 = vld [vmem:[%s4477_s3 + $0x380] sm:$0xff]  }
 0x20c   :  { %3112 = vmatprep.subr.bf16.mxu1 %v3495_v13  ;;  %3133 = vmatprep.subr.bf16.mxu0 %v3497_v14  ;;  %v3543_v13 = vld [vmem:[%s4477_s3 + $0x3c0] sm:$0xff]  }
 0x20d   :  { %v3542_v14 = vld [vmem:[%s4477_s3 + $0x2e0] sm:$0xff]  }
 0x20e   :  { %3113 = vmatpush3.bf16.msra.mxu1 %v3496_v16  ;;  %v3545_v16 = vld [vmem:[%s4477_s3 + $0x318] sm:$0xff]  }
 0x20f   :  { %3134 = vmatpush3.bf16.msra.mxu0 %v3498_v17  ;;  %3114 = vmatprep.subr.bf16.mxu1 %v3499_v19  ;;  %v3547_v17 = vld [vmem:[%s4477_s3 + $0x3b8] sm:$0xff]  }
 0x210   :  { %3135 = vmatprep.subr.bf16.mxu0 %v3501_v47  ;;  %v3546_v19 = vld [vmem:[%s4477_s3 + $0x2d8] sm:$0xff]  }
 0x211   :  { %v3548_v47 = vld [vmem:[%s4477_s3 + $0x378] sm:$0xff]  }
 0x212   :  { %3115 = vmatpush3.bf16.msra.mxu1 %v3500_v49  ;;  %v3549_v49 = vld [vmem:[%s4477_s3 + $0x310] sm:$0xff]  }
 0x213   :  { %3136 = vmatpush3.bf16.msra.mxu0 %v3502_v48  ;;  %3116 = vmatprep.subr.bf16.mxu1 %v3503_v20  ;;  %v3551_v48 = vld [vmem:[%s4477_s3 + $0x3b0] sm:$0xff]  }
 0x214   :  { %3137 = vmatprep.subr.bf16.mxu0 %v3505_v4  ;;  %v3550_v20 = vld [vmem:[%s4477_s3 + $0x2d0] sm:$0xff]  }
 0x215   :  { %v3552_v4 = vld [vmem:[%s4477_s3 + $0x370] sm:$0xff]  }
 0x216   :  { %3117 = vmatpush3.bf16.msra.mxu1 %v3504_v21  ;;  %v3553_v21 = vld [vmem:[%s4477_s3 + $0x3a8] sm:$0xff]  }
 0x217   :  { %3138 = vmatpush3.bf16.msra.mxu0 %v3506_v52  ;;  %3118 = vmatprep.subr.bf16.mxu1 %v3507_v22  ;;  %v3554_v52 = vld [vmem:[%s4477_s3 + $0x3e8] sm:$0xff]   ;;  %v1104_v22 = vld [vmem:[#allocation3 + $0x2a] sm:$0x3f] }
 0x218   :  { %3139 = vmatprep.subr.bf16.mxu0 %v3509_v23  ;;  %v1209_v23 = vcombine.high %v4267_v46, %v4267_v46  ;;  %v3567_v46 = vld [vmem:[%s4477_s3 + $0x418] sm:$0xff]  }
 0x21a   :  { %3119 = vmatpush3.bf16.msra.mxu1 %v3508_v24  ;;  %v1280_v24 = vpack.c.bf16 %v4247_v37, %v4247_v37  ;;  %v1225_v37 = vcombine.high %v1104_v22, %v1104_v22 }
 0x21b   :  { %3140 = vmatpush3.bf16.msra.mxu0 %v3510_v26  ;;  %3120 = vmatprep.subr.bf16.mxu1 %v3511_v27  ;;  %v3555_v26 = vld [vmem:[%s4477_s3 + $0x368] sm:$0xff]   ;;  %v3556_v27 = vld [vmem:[%s4477_s3 + $0x3a0] sm:$0xff]  }
 0x21c   :  { %3141 = vmatprep.subr.bf16.mxu0 %v3513_v28  ;;  %v1232_v28 = vrot.slane %v1104_v22, %v3980_v33 }
 0x21e   :  { %3121 = vmatpush3.bf16.msra.mxu1 %v3512_v29  ;;  %v3557_v29 = vld [vmem:[%s4477_s3 + $0x3e0] sm:$0xff]   ;;  %v1240_v18 = vcombine.high %v1232_v28, %v1232_v28 }
 0x21f   :  { %3142 = vmatpush3.bf16.msra.mxu0 %v3514_v30  ;;  %3291 = vmatprep.subr.bf16.mxu1 %v3791_v43  ;;  %v1223_v30 = vrot.slane %v1209_v23, %v3980_v33 }
 0x220   :  { %3143 = vmatprep.subr.bf16.mxu0 %v3515_v31  ;;  %v3558_v31 = vld [vmem:[%s4477_s3 + $0x360] sm:$0xff]   ;;  %v1287_v39 = vpack.c.bf16 %v1240_v18, %v1240_v18 }
 0x221   :  { %2006 = vmatmul.mubr.bf16.vlgmr.msra.gmra.mxu1 %v1274_v34  ;;  %v1285_v34 = vpack.c.bf16 %v1223_v30, %v1223_v30 }
 0x222   :  { %3292 = vmatpush3.bf16.msra.mxu1 %v3516_v32  ;;  %3295 = vmatprep.mubr.msk.bf16.mxu1 %vm3610_vm6, %v3791_v43  ;;  %v3559_v32 = vld [vmem:[%s4477_s3 + $0x468] sm:$0xff]  }
 0x223   :  { %3144 = vmatpush3.bf16.msra.mxu0 %v3517_v35  ;;  %3293 = vmatprep.subr.bf16.mxu1 %v3791_v43  ;;  %v3562_v35 = vld [vmem:[%s4477_s3 + $0x478] sm:$0xff]  }
 0x224   :  { %3145 = vmatprep.subr.bf16.mxu0 %v3518_v36  ;;  %v1283_v36 = vpack.c.bf16 %v4281_v58, %v4281_v58  ;;  %v3575_v58 = vld [vmem:[%s4477_s3 + $0x3f8] sm:$0xff]  }
 0x226   :  { %3294 = vmatpush3.bf16.msra.mxu1 %v3519_v38  ;;  %v3563_v38 = vld [vmem:[%s4477_s3 + $0x460] sm:$0xff]  }
 0x227   :  { %3146 = vmatpush3.bf16.msra.mxu0 %v3520_v40  ;;  %3156 = vmatprep.subr.bf16.mxu1 %v3521_v41  ;;  %v3564_v40 = vld [vmem:[%s4477_s3 + $0x420] sm:$0xff]   ;;  %v3565_v41 = vld [vmem:[%s4477_s3 + $0x470] sm:$0xff]  }
 0x228   :  { %3299 = vmatprep.subr.bf16.mxu0 %v3791_v43 }
 0x229   :  { %3296 = vmatmul.mubr.msk.bf16.vlgmr.msra.gmra.mxu1 %vm335_vm0, %v1279_v51  ;;  %v3568_v51 = vld [vmem:[%s4477_s3 + $0x450] sm:$0xff]  }
 0x22a   :  { %2197 = vmatmul.mubr.bf16.vlgmr.msra.gmra.mxu0 %v1277_v54  ;;  %3157 = vmatpush3.bf16.msra.mxu1 %v3522_v45  ;;  %v1239_v45 = vrot.slane %v1225_v37, %v3980_v33  ;;  %v3569_v33 = vld [vmem:[%s4477_s3 + $0x410] sm:$0xff]   ;;  %v3571_v54 = vld [vmem:[%s4477_s3 + $0x408] sm:$0xff]  }
 0x22b   :  { %2387 = vmatprep.mubr.bf16.mxu1 %v1281_v57  ;;  %3300 = vmatpush3.bf16.msra.mxu0 %v3524_v53  ;;  %v3574_v57 = vld [vmem:[%s4477_s3 + $0x438] sm:$0xff]  }
 0x22c   :  { %3158 = vmatprep.subr.bf16.mxu1 %v3525_v56  ;;  %3301 = vmatprep.subr.bf16.mxu0 %v3791_v43  ;;  %v1288_v53 = vpack.c.bf16 %v1239_v45, %v1239_v45  ;;  %v3573_v56 = vld [vmem:[%s4477_s3 + $0x400] sm:$0xff]  }
 0x22d   :  { %3303 = vmatprep.mubr.msk.bf16.mxu0 %vm3610_vm6, %v3791_v43 }
 0x22e   :  { %3159 = vmatpush3.bf16.msra.mxu1 %v3526_v59  ;;  %v3576_v59 = vld [vmem:[%s4477_s3 + $0x430] sm:$0xff]  }
 0x22f   :  { %3302 = vmatpush3.bf16.msra.mxu0 %v3527_v60  ;;  %3160 = vmatprep.subr.bf16.mxu1 %v3528_v61  ;;  %v3577_v60 = vld [vmem:[%s4477_s3 + $0x3f0] sm:$0xff]   ;;  %v1286_v61 = vpack.c.bf16 %v1232_v28, %v1232_v28 }
 0x230   :  { %3181 = vmatprep.subr.bf16.mxu0 %v3530_v63 }
 0x232   :  { %3161 = vmatpush3.bf16.msra.mxu1 %v3529_v1  ;;  %3304 = vmatmul.mubr.msk.bf16.vlgmr.msra.gmra.mxu0 %vm335_vm0, %v1282_v3 }
 0x233   :  { %3182 = vmatpush3.bf16.msra.mxu0 %v3531_v2  ;;  %2578 = vmatprep.mubr.bf16.mxu0 %v1284_v25 }
 0x234   :  { %3162 = vmatprep.subr.bf16.mxu1 %v3533_v5  ;;  %3183 = vmatprep.subr.bf16.mxu0 %v3535_v44 }
 0x236   :  { %3163 = vmatpush3.bf16.msra.mxu1 %v3534_v6 }
 0x237   :  { %3184 = vmatpush3.bf16.msra.mxu0 %v3536_v7  ;;  %3164 = vmatprep.subr.bf16.mxu1 %v3537_v8 }
 0x238   :  { %3185 = vmatprep.subr.bf16.mxu0 %v3539_v9 }
 0x23a   :  { %3165 = vmatpush3.bf16.msra.mxu1 %v3538_v10 }
 0x23b   :  { %3186 = vmatpush3.bf16.msra.mxu0 %v3540_v11  ;;  %3166 = vmatprep.subr.bf16.mxu1 %v3541_v12 }
 0x23c   :  { %3187 = vmatprep.subr.bf16.mxu0 %v3543_v13 }
 0x23e   :  { %3167 = vmatpush3.bf16.msra.mxu1 %v3542_v14 }
 0x23f   :  { %3188 = vmatpush3.bf16.msra.mxu0 %v3544_v15  ;;  %3168 = vmatprep.subr.bf16.mxu1 %v3545_v16 }
 0x240   :  { %3189 = vmatprep.subr.bf16.mxu0 %v3547_v17 }
 0x242   :  { %3169 = vmatpush3.bf16.msra.mxu1 %v3546_v19 }
 0x243   :  { %3190 = vmatpush3.bf16.msra.mxu0 %v3548_v47  ;;  %3170 = vmatprep.subr.bf16.mxu1 %v3549_v49 }
 0x244   :  { %3191 = vmatprep.subr.bf16.mxu0 %v3551_v48 }
 0x246   :  { %3171 = vmatpush3.bf16.msra.mxu1 %v3550_v20 }
 0x247   :  { %3192 = vmatpush3.bf16.msra.mxu0 %v3552_v4  ;;  %3307 = vmatprep.subr.bf16.mxu1 %v3791_v43 }
 0x248   :  { %3193 = vmatprep.subr.bf16.mxu0 %v3553_v21 }
 0x249   :  { %2388 = vmatmul.mubr.bf16.vlgmr.msra.gmra.mxu1 %v1280_v24 }
 0x24a   :  { %3308 = vmatpush3.bf16.msra.mxu1 %v3554_v52  ;;  %3311 = vmatprep.mubr.msk.bf16.mxu1 %vm3610_vm6, %v3791_v43 }
 0x24b   :  { %3194 = vmatpush3.bf16.msra.mxu0 %v3555_v26  ;;  %3309 = vmatprep.subr.bf16.mxu1 %v3791_v43 }
 0x24c   :  { %3195 = vmatprep.subr.bf16.mxu0 %v3556_v27 }
 0x24e   :  { %3310 = vmatpush3.bf16.msra.mxu1 %v3557_v29 }
 0x24f   :  { %3196 = vmatpush3.bf16.msra.mxu0 %v3558_v31  ;;  %3206 = vmatprep.subr.bf16.mxu1 %v3559_v32 }
 0x250   :  { %3315 = vmatprep.subr.bf16.mxu0 %v3791_v43 }
 0x251   :  { %3312 = vmatmul.mubr.msk.bf16.vlgmr.msra.gmra.mxu1 %vm335_vm0, %v1285_v34 }
 0x252   :  { %2579 = vmatmul.mubr.bf16.vlgmr.msra.gmra.mxu0 %v1283_v36  ;;  %3207 = vmatpush3.bf16.msra.mxu1 %v3560_v50 }
 0x253   :  { %2769 = vmatprep.mubr.bf16.mxu1 %v1287_v39  ;;  %3316 = vmatpush3.bf16.msra.mxu0 %v3562_v35 }
 0x254   :  { %3208 = vmatprep.subr.bf16.mxu1 %v3563_v38  ;;  %3317 = vmatprep.subr.bf16.mxu0 %v3791_v43 }
 0x255   :  { %3319 = vmatprep.mubr.msk.bf16.mxu0 %vm3610_vm6, %v3791_v43  ;;  %v3570_v43 = vld [vmem:[%s4477_s3 + $0x448] sm:$0xff]  }
 0x256   :  { %3209 = vmatpush3.bf16.msra.mxu1 %v3564_v40 }
 0x257   :  { %3318 = vmatpush3.bf16.msra.mxu0 %v3565_v41  ;;  %3210 = vmatprep.subr.bf16.mxu1 %v3566_v42 }
 0x25a   :  { %3211 = vmatpush3.bf16.msra.mxu1 %v3567_v46  ;;  %3320 = vmatmul.mubr.msk.bf16.vlgmr.msra.gmra.mxu0 %vm335_vm0, %v1288_v53  ;;  %vm2817_vm0 = vcmask 254976  }
 0x25b   :  { %3212 = vmatprep.subr.bf16.mxu1 %v3568_v51 }
 0x25e   :  { %3213 = vmatpush3.bf16.msra.mxu1 %v3569_v33 }
 0x25f   :  { %3214 = vmatprep.subr.bf16.mxu1 %v3570_v43 }
 0x262   :  { %3215 = vmatpush3.bf16.msra.mxu1 %v3571_v54 }
 0x263   :  { %3216 = vmatprep.subr.bf16.mxu1 %v3572_v55 }
 0x266   :  { %3217 = vmatpush3.bf16.msra.mxu1 %v3573_v56 }
 0x267   :  { %3218 = vmatprep.subr.bf16.mxu1 %v3574_v57 }
 0x26a   :  { %3219 = vmatpush3.bf16.msra.mxu1 %v3575_v58 }
 0x26b   :  { %3220 = vmatprep.subr.bf16.mxu1 %v3576_v59 }
 0x26e   :  { %3221 = vmatpush3.bf16.msra.mxu1 %v3577_v60 }
 0x271   :  { %2770 = vmatmul.mubr.bf16.vlgmr.msra.gmra.mxu1 %v1286_v61 }
 0x299   :  { %v1474_v62 = vpop.f32.mrf.mxu1 }
 0x29a   :  { %v3047_v63 = vpop.f32.mrf.mxu0 }
 0x29b   :  { %v3265_v0 = vpop.f32.mrf.mxu1 }
 0x29c   :  { %v3048_v1 = vpop.f32.mrf.mxu0 }
 0x29d   :  { %v3049_v2 = vadd.f32 %v3048_v1, %v3047_v63  ;;  %v1477_v3 = vpop.f32.mrf.mxu1 }
 0x29e   :  { %v3050_v5 = vpop.f32.mrf.mxu0 }
 0x29f   :  { %v1475_v44 = vadd.f32 %v3049_v2, %v1474_v62  ;;  %v3266_v25 = vpop.f32.mrf.mxu1 }
 0x2a0   :  { %v3051_v6 = vpop.f32.mrf.mxu0 }
 0x2a1   :  { %v2818_v17 = vsel %vm2817_vm0, %v1475_v44, 0.0 }
 0x2a2   :  { %v1665_v7 = vpop.f32.mrf.mxu0 }
 0x2a4   :  { %v3273_v8 = vpop.f32.mrf.mxu0 }
 0x2a6   :  { %v1668_v9 = vpop.f32.mrf.mxu0 }
 0x2a8   :  { %v3274_v10 = vpop.f32.mrf.mxu0 }
 0x2b9   :  { %v3072_v11 = vpop.f32.mrf.mxu1 }
 0x2bb   :  { %v3073_v12 = vpop.f32.mrf.mxu1 }
 0x2bc   :  { %v3074_v13 = vadd.f32 %v3073_v12, %v3072_v11 }
 0x2bd   :  { %v3075_v14 = vpop.f32.mrf.mxu1 }
 0x2be   :  { %v1666_v15 = vadd.f32 %v3074_v13, %v1665_v7 }
 0x2bf   :  { %v3076_v16 = vpop.f32.mrf.mxu1 }
 0x2c0   :  { %v2819_v19 = vsel %vm2817_vm0, %v1666_v15, 0.0 }
 0x2c1   :  { %v2820_v47 = vadd.f32 %v2819_v19, %v2818_v17  ;;  %v1856_v49 = vpop.f32.mrf.mxu1 }
 0x2c2   :  { %v3097_v48 = vpop.f32.mrf.mxu0 }
 0x2c3   :  { %v3281_v20 = vpop.f32.mrf.mxu1 }
 0x2c4   :  { %v3098_v4 = vpop.f32.mrf.mxu0 }
 0x2c5   :  { %v3099_v21 = vadd.f32 %v3098_v4, %v3097_v48  ;;  %v1859_v52 = vpop.f32.mrf.mxu1 }
 0x2c6   :  { %v3100_v22 = vpop.f32.mrf.mxu0 }
 0x2c7   :  { %v1857_v23 = vadd.f32 %v3099_v21, %v1856_v49  ;;  %v3282_v24 = vpop.f32.mrf.mxu1  ;;  %v3018_v22 = vld [vmem:[%s4478_s4] ss:$0 sm:$0xff]  ;;  %s3579_s4 = scalar_lea.vmem %s2853_s20, 32 }
 0x2c8   :  { %v3101_v26 = vpop.f32.mrf.mxu0  ;;  %p3580_p0 = scmp.ne.s32.totalorder %s2853_s20, %s3579_s4  ;;  %p3585_p2 = scmp.lt.s32.totalorder %s3579_s4, %s3579_s4 }
 0x2c9   :  { %v2821_v27 = vsel %vm2817_vm0, %v1857_v23, 0.0 }
 0x2ca   :  { %v2822_v28 = vadd.f32 %v2821_v27, %v2820_v47  ;;  %v2047_v29 = vpop.f32.mrf.mxu0  ;;  %p3586_p3 = por %p3585_p2, %p3584_p1 }
 0x2cc   :  { %v3289_v30 = vpop.f32.mrf.mxu0  ;;  %p3587_p4 = pnand %p3586_p3, %p3580_p0 }
 0x2ce   :  { %v2050_v31 = vpop.f32.mrf.mxu0 }
 0x2d0   :  { %v3290_v32 = vpop.f32.mrf.mxu0 }
 0x2e1   :  { %v3122_v18 = vpop.f32.mrf.mxu1 }
 0x2e3   :  { %v3123_v50 = vpop.f32.mrf.mxu1 }
 0x2e4   :  { %v3124_v34 = vadd.f32 %v3123_v50, %v3122_v18 }
 0x2e5   :  { %v3125_v35 = vpop.f32.mrf.mxu1 }
 0x2e6   :  { %v2048_v36 = vadd.f32 %v3124_v34, %v2047_v29 }
 0x2e7   :  { %v3126_v37 = vpop.f32.mrf.mxu1 }
 0x2e8   :  { %v2823_v38 = vsel %vm2817_vm0, %v2048_v36, 0.0 }
 0x2e9   :  { %v2824_v39 = vadd.f32 %v2823_v38, %v2822_v28  ;;  %v2238_v40 = vpop.f32.mrf.mxu1 }
 0x2ea   :  { %v3147_v41 = vpop.f32.mrf.mxu0 }
 0x2eb   :  { %v3297_v42 = vpop.f32.mrf.mxu1 }
 0x2ec   :  { %v3148_v45 = vpop.f32.mrf.mxu0 }
 0x2ed   :  { %v3149_v46 = vadd.f32 %v3148_v45, %v3147_v41  ;;  %v2241_v51 = vpop.f32.mrf.mxu1 }
 0x2ee   :  { %v3150_v53 = vpop.f32.mrf.mxu0 }
 0x2ef   :  { %v2239_v33 = vadd.f32 %v3149_v46, %v2238_v40  ;;  %v3298_v43 = vpop.f32.mrf.mxu1 }
 0x2f0   :  { %v3151_v54 = vpop.f32.mrf.mxu0 }
 0x2f1   :  { %v2825_v55 = vsel %vm2817_vm0, %v2239_v33, 0.0 }
 0x2f2   :  { %v2826_v56 = vadd.f32 %v2825_v55, %v2824_v39  ;;  %v2429_v57 = vpop.f32.mrf.mxu0 }
 0x2f4   :  { %v3305_v58 = vpop.f32.mrf.mxu0 }
 0x2f6   :  { %v2432_v59 = vpop.f32.mrf.mxu0 }
 0x2f8   :  { %v3306_v60 = vpop.f32.mrf.mxu0 }
 0x309   :  { %v3172_v61 = vpop.f32.mrf.mxu1 }
 0x30b   :  { %v3173_v62 = vpop.f32.mrf.mxu1 }
 0x30c   :  { %v3174_v12 = vadd.f32 %v3173_v62, %v3172_v61 }
 0x30d   :  { %v3175_v63 = vpop.f32.mrf.mxu1 }
 0x30e   :  { %v2430_v14 = vadd.f32 %v3174_v12, %v2429_v57 }
 0x30f   :  { %v3176_v0 = vpop.f32.mrf.mxu1 }
 0x310   :  { %v2827_v17 = vsel %vm2817_vm0, %v2430_v14, 0.0 }
 0x311   :  { %v2620_v1 = vpop.f32.mrf.mxu1  ;;  %v2828_v48 = vadd.f32 %v2827_v17, %v2826_v56 }
 0x312   :  { %v3197_v2 = vpop.f32.mrf.mxu0 }
 0x313   :  { %v3313_v3 = vpop.f32.mrf.mxu1 }
 0x314   :  { %v3198_v5 = vpop.f32.mrf.mxu0 }
 0x315   :  { %v2623_v44 = vpop.f32.mrf.mxu1  ;;  %v3199_v13 = vadd.f32 %v3198_v5, %v3197_v2 }
 0x316   :  { %v3200_v25 = vpop.f32.mrf.mxu0 }
 0x317   :  { %v3314_v6 = vpop.f32.mrf.mxu1  ;;  %v2621_v15 = vadd.f32 %v3199_v13, %v2620_v1 }
 0x318   :  { %v3201_v7 = vpop.f32.mrf.mxu0 }
 0x319   :  { %v2829_v47 = vsel %vm2817_vm0, %v2621_v15, 0.0 }
 0x31a   :  { %v2811_v8 = vpop.f32.mrf.mxu0  ;;  %v2830_v21 = vadd.f32 %v2829_v47, %v2828_v48 }
 0x31c   :  { %v3321_v9 = vpop.f32.mrf.mxu0 }
 0x31e   :  { %v2814_v10 = vpop.f32.mrf.mxu0 }
 0x320   :  { %v3322_v11 = vpop.f32.mrf.mxu0 }
 0x331   :  { %v3222_v16 = vpop.f32.mrf.mxu1 }
 0x333   :  { %v3223_v19 = vpop.f32.mrf.mxu1 }
 0x334   :  { %v3224_v49 = vadd.f32 %v3223_v19, %v3222_v16 }
 0x335   :  { %v3225_v20 = vpop.f32.mrf.mxu1 }
 0x336   :  { %v2812_v4 = vadd.f32 %v3224_v49, %v2811_v8 }
 0x337   :  { %v3226_v52 = vpop.f32.mrf.mxu1 }
 0x338   :  { %v2831_v23 = vsel %vm2817_vm0, %v2812_v4, 0.0 }
 0x339   :  { %v2832_v24 = vadd.f32 %v2831_v23, %v2830_v21 }
 0x33b   :  { %v2839_v26 = vadd.f32 %v3018_v22, %v2832_v24 }
 0x33d   :  { %v3405_v27 = vcvt.f32.s32 %v2839_v26  ;;  %v3403_v29 = vand.u32 2147483647, %v2839_v26  ;;  %v3408_v31 = vand.u32 2147483648, %v2839_v26 }
 0x33f   :  { %v3406_v28 = vcvt.s32.f32 %v3405_v27  ;;  %vm3404_vm6 = vcmp.lt.f32.partialorder %v3403_v29, 8388608.0 }
 0x341   :  { %v3407_v30 = vand.u32 2147483647, %v3406_v28 }
 0x343   :  { %v3409_v32 = vor.u32 %v3408_v31, %v3407_v30 }
 0x345   :  { %v3410_v18 = vsel %vm3404_vm6, %v3409_v32, %v2839_v26 }
 0x346   :  { %v2841_v50 = vmax.f32 %v3410_v18, -128.0 }
 0x348   :  { %v2842_v34 = vmin.f32 %v2841_v50, 127.0 }
 0x34a   :  { %v2843_v35 = vmax.f32 %v2842_v34, 0.0 }
 0x34c   :  { %v2844_v36 = vmul.f32 0.0078125, %v2843_v35 }
 0x34e   :  { %2845 = vst.msk [vmem:[#allocation4] sm:$0x3] %vm2817_vm0, %v2844_v36 }
 0x34f   :  { %3590 = shalt.err (!%p3587_p4)
}
 0x350   :  { %2855 = dma.vmem_to_hbm [thread:$0]  %s2853_s20, 32, %s4479_s5, [#allocation5]  }
 0x351   :  { %3599 = dma.done.wait [#allocation5], 32  }
 0x352   :  { %3600 = vsyncadd [#allocation5], 4294967264 }
 0x353   :  { %2859 = vsyncpa [#allocation5], 1 }

</bundles_post_ra>
